<compile_context>
chip_gen: v7x
topology: tpu7x:2x2x1
jax: 0.10.0
libtpu: 0.0.40
codegen_flags: <defaults>
</compile_context>

<pallas_src>
import functools
import math

import jax
import jax.numpy as jnp
from jax import lax
from jax.experimental import pallas as pl
from jax.experimental.pallas import tpu as pltpu


def _ot_kernel(x_ref, t_ref, c_ref, o_ref, *, inv_eps, x_scale, max_iter, n, m):
    # One batch element per grid step; full N/M/D tiles are resident in VMEM.
    x = x_ref[0]                                  # (N, D)
    tgt = t_ref[0].astype(jnp.float32)            # (M, D)
    iou = c_ref[0].astype(jnp.float32)            # (N, M)

    # Fold 1/(sqrt(D)*eps) into x once (N*D multiply instead of N*M), then
    # cast the matmul operands to bf16 for the MXU (f32 accumulation).
    x_b = (x.astype(jnp.float32) * x_scale).astype(jnp.bfloat16)   # (N, D)
    t_b = tgt.astype(jnp.bfloat16)                                  # (M, D)

    # sim_scaled[n, m] = <x[n], tgt[m]> / (sqrt(D) * eps)
    # rhs-contracted dot (q·k^T pattern): no explicit transpose of tgt needed.
    sim = lax.dot_general(x_b, t_b, (((1,), (1,)), ((), ())),
                          preferred_element_type=jnp.float32)       # (N, M)
    arg = sim - iou * inv_eps

    # Per-row max subtraction: exactly cancels through diag(u) and prevents
    # exp overflow of the non-log-domain Gibbs kernel.
    K = jnp.exp(arg - jnp.max(arg, axis=1, keepdims=True))          # (N, M) f32
    # TODO(synk): for v7x (64 MiB VMEM) hold K in bf16 (f32 accumulation) to
    # halve its footprint; kept f32 here for accuracy.

    a = jnp.float32(m) / jnp.float32(n)       # uniform-marginal ratio
    tiny = jnp.float32(1e-35)                 # guards fully-underflowed rows/cols

    # Row-vector form so both Sinkhorn matvecs use MXU-friendly contractions.
    u0 = jnp.ones((1, n), jnp.float32)
    v0 = jnp.ones((1, m), jnp.float32)

    def body(_, carry):
        u, v, _v_prev = carry
        # kv[n] = sum_m K[n,m] v[m]   -> (1, N)   (contract both dim 1)
        kv = lax.dot_general(v, K, (((1,), (1,)), ((), ())),
                             preferred_element_type=jnp.float32)
        u_new = a * pl.reciprocal(jnp.maximum(kv, tiny), approx=True)
        # ktu[m] = sum_n u[n] K[n,m] -> (1, M)   (standard matmul)
        ktu = lax.dot_general(u_new, K, (((1,), (0,)), ((), ())),
                              preferred_element_type=jnp.float32)
        v_new = pl.reciprocal(jnp.maximum(ktu, tiny), approx=True)
        return u_new, v_new, v                 # keep v_{k-1} for the epilogue

    _, v, v_prev = lax.fori_loop(0, max_iter, body, (u0, v0, v0), unroll=True)

    # Recompute the final u directly in column form (N, 1) from v_{k-1} with a
    # rhs-contracted matvec -- same contraction as in the loop, but avoids a
    # (1, N) -> (N, 1) relayout.
    kv_col = lax.dot_general(K, v_prev, (((1,), (1,)), ((), ())),
                             preferred_element_type=jnp.float32)    # (N, 1)
    u_col = a * pl.reciprocal(jnp.maximum(kv_col, tiny), approx=True)

    # out = diag(u) K diag(v) @ tgt without materializing the transport plan:
    # fold v into K (lane broadcast), one MXU matmul, then row-scale by u.
    Kv = K * v                                                      # (N, M)
    out = u_col * lax.dot_general(Kv, tgt, (((1,), (0,)), ((), ())),
                                  preferred_element_type=jnp.float32)
    o_ref[0] = out.astype(o_ref.dtype)


def ot_layer_forward(x, target, iou_cost, *, eps=0.1, max_iter=10, heads=1):
    # heads=1 (module default); with a shared externally-supplied target the
    # multi-head split is a no-op, so it is not materialized.
    del heads
    B, N, D = x.shape
    _, M, _ = target.shape

    kernel = functools.partial(
        _ot_kernel,
        inv_eps=float(1.0 / eps),
        x_scale=float(1.0 / (math.sqrt(D) * eps)),
        max_iter=int(max_iter), n=N, m=M)

    # Scoped-VMEM budget: double-buffered x/target/iou/out blocks + resident K
    # + slack.  (On v7x physical VMEM is 64 MiB; re-tile / bf16-K if exceeded.)
    block_bytes = 4 * (N * D + M * D + N * M + N * D)
    vmem_limit = min(128 * 1024 * 1024,
                     max(32 * 1024 * 1024, 2 * block_bytes + 4 * N * M + (8 << 20)))

    return pl.pallas_call(
        kernel,
        out_shape=jax.ShapeDtypeStruct((B, N, D), jnp.float32),
        grid=(B,),
        in_specs=[
            pl.BlockSpec((1, N, D), lambda b: (b, 0, 0)),
            pl.BlockSpec((1, M, D), lambda b: (b, 0, 0)),
            pl.BlockSpec((1, N, M), lambda b: (b, 0, 0)),
        ],
        out_specs=pl.BlockSpec((1, N, D), lambda b: (b, 0, 0)),
        compiler_params=pltpu.CompilerParams(
            dimension_semantics=("parallel",),
            vmem_limit_bytes=int(vmem_limit)),
    )(x, target, iou_cost)


def _reference(x, target, iou_cost, *, eps=0.1, max_iter=10):
    # Pure-JAX reference (explicit plan, python loop, exact divisions).
    # Matches the kernel's MXU dtype policy (bf16 operands, f32 accumulation)
    # so the comparison isolates the Sinkhorn/plan implementation; algebraically
    # identical to exp((sim/sqrt(D) - iou)/eps) with an f32 similarity.
    B, N, D = x.shape
    M = target.shape[1]
    x_scale = 1.0 / (math.sqrt(D) * eps)
    xs = (x * x_scale).astype(jnp.bfloat16)
    ts = target.astype(jnp.bfloat16)
    arg = jnp.einsum("bnd,bmd->bnm", xs, ts,
                     preferred_element_type=jnp.float32) - iou_cost * (1.0 / eps)
    K = jnp.exp(arg)
    u = jnp.ones((B, N, 1), jnp.float32)
    v = jnp.ones((B, 1, M), jnp.float32)
    a = M / N
    for _ in range(max_iter):
        u = a / jnp.sum(K * v, axis=2, keepdims=True)
        v = 1.0 / jnp.sum(K * u, axis=1, keepdims=True)
    plan = u * K * v
    return jnp.einsum("bnm,bmd->bnd", plan, target)


if __name__ == "__main__":
    key = jax.random.PRNGKey(0)
    k1, k2, k3 = jax.random.split(key, 3)

    # Small but lane-friendly shapes; M != N exercises the uniform-marginal ratio.
    B, N, M, D = 2, 128, 64, 128
    x = jax.random.normal(k1, (B, N, D), dtype=jnp.float32)
    target = jax.random.normal(k2, (B, M, D), dtype=jnp.float32)
    iou_cost = jax.random.uniform(k3, (B, N, M), dtype=jnp.float32)

    out = ot_layer_forward(x, target, iou_cost, eps=0.1, max_iter=10)
    out = jax.block_until_ready(out)

    ref = _reference(x, target, iou_cost, eps=0.1, max_iter=10)
    assert out.shape == (B, N, D)
    assert bool(jnp.all(jnp.isfinite(out)))
    # Tolerance covers the EUP approx reciprocals and MXU-vs-XLA accumulation
    # order; a structural bug would be orders of magnitude larger.
    assert jnp.allclose(out, ref, atol=5e-3, rtol=5e-3), \
        float(jnp.max(jnp.abs(out - ref)))

    print("KERNEL_OK")
</pallas_src>

<mosaic_0001>
module attributes {stable_mosaic.version = 11 : i64} {
  func.func @_ot_kernel(%arg0: i32, %arg1: memref<1x128x128xf32, #tpu.memory_space<vmem>>, %arg2: memref<1x64x128xf32, #tpu.memory_space<vmem>>, %arg3: memref<1x128x64xf32, #tpu.memory_space<vmem>>, %arg4: memref<1x128x128xf32, #tpu.memory_space<vmem>>) attributes {dimension_semantics = [#tpu.dimension_semantics<parallel>], iteration_bounds = array<i64: 2>, scalar_prefetch = 0 : i64, scratch_operands = 0 : i64, tpu.core_type = #tpu.core_type<tc>, window_params = [{transform_indices = @transform_0, window_bounds = array<i64: 1, 128, 128>}, {transform_indices = @transform_1, window_bounds = array<i64: 1, 64, 128>}, {transform_indices = @transform_2, window_bounds = array<i64: 1, 128, 64>}, {transform_indices = @transform_3, window_bounds = array<i64: 1, 128, 128>}]} {
    %c0 = arith.constant 0 : index
    %c0_0 = arith.constant 0 : index
    %c0_1 = arith.constant 0 : index
    %0 = vector.load %arg1[%c0, %c0_0, %c0_1] : memref<1x128x128xf32, #tpu.memory_space<vmem>>, vector<1x128x128xf32>
    %1 = vector.shape_cast %0 : vector<1x128x128xf32> to vector<128x128xf32>
    %c0_2 = arith.constant 0 : index
    %c0_3 = arith.constant 0 : index
    %c0_4 = arith.constant 0 : index
    %2 = vector.load %arg2[%c0_2, %c0_3, %c0_4] : memref<1x64x128xf32, #tpu.memory_space<vmem>>, vector<1x64x128xf32>
    %3 = vector.shape_cast %2 : vector<1x64x128xf32> to vector<64x128xf32>
    %c0_5 = arith.constant 0 : index
    %c0_6 = arith.constant 0 : index
    %c0_7 = arith.constant 0 : index
    %4 = vector.load %arg3[%c0_5, %c0_6, %c0_7] : memref<1x128x64xf32, #tpu.memory_space<vmem>>, vector<1x128x64xf32>
    %5 = vector.shape_cast %4 : vector<1x128x64xf32> to vector<128x64xf32>
    %cst = arith.constant 0.883883476 : f32
    %6 = vector.broadcast %cst : f32 to vector<128x128xf32>
    %7 = arith.mulf %1, %6 : vector<128x128xf32>
    %8 = arith.truncf %7 : vector<128x128xf32> to vector<128x128xbf16>
    %9 = arith.truncf %3 : vector<64x128xf32> to vector<64x128xbf16>
    %cst_8 = arith.constant dense<0.000000e+00> : vector<128x64xf32>
    %10 = tpu.matmul %8, %9, %cst_8 {dimension_numbers = #tpu.dot_dimension_numbers<[1], [1], [0], [0], [0, 0, 1, 0], [], []>} : vector<128x128xbf16>, vector<64x128xbf16>, vector<128x64xf32> -> vector<128x64xf32>
    %cst_9 = arith.constant 1.000000e+01 : f32
    %11 = vector.broadcast %cst_9 : f32 to vector<128x64xf32>
    %12 = arith.mulf %5, %11 : vector<128x64xf32>
    %13 = arith.subf %10, %12 : vector<128x64xf32>
    %cst_10 = arith.constant dense<0xFF800000> : vector<128xf32>
    %14 = vector.multi_reduction <maximumf>, %13, %cst_10 [1] : vector<128x64xf32> to vector<128xf32>
    %15 = vector.shape_cast %14 : vector<128xf32> to vector<128x1xf32>
    %16 = vector.broadcast %15 : vector<128x1xf32> to vector<128x64xf32>
    %17 = arith.subf %13, %16 : vector<128x64xf32>
    %18 = math.exp %17 : vector<128x64xf32>
    %cst_11 = arith.constant 6.400000e+01 : f32
    %cst_12 = arith.constant 1.280000e+02 : f32
    %19 = arith.divf %cst_11, %cst_12 : f32
    %cst_13 = arith.constant 1.000000e+00 : f32
    %20 = vector.broadcast %cst_13 : f32 to vector<1x64xf32>
    %cst_14 = arith.constant 1.000000e-35 : f32
    %c0_i32 = arith.constant 0 : i32
    %cst_15 = arith.constant dense<0.000000e+00> : vector<1x128xf32>
    %21 = tpu.matmul %20, %18, %cst_15 {dimension_numbers = #tpu.dot_dimension_numbers<[1], [1], [0], [0], [0, 0, 1, 0], [], []>} : vector<1x64xf32>, vector<128x64xf32>, vector<1x128xf32> -> vector<1x128xf32>
    %22 = vector.broadcast %cst_14 : f32 to vector<1x128xf32>
    %23 = arith.maximumf %21, %22 : vector<1x128xf32>
    %24 = tpu.reciprocal %23 {approx = true} : vector<1x128xf32> -> vector<1x128xf32>
    %25 = vector.broadcast %19 : f32 to vector<1x128xf32>
    %26 = arith.mulf %25, %24 : vector<1x128xf32>
    %cst_16 = arith.constant dense<0.000000e+00> : vector<1x64xf32>
    %27 = tpu.matmul %26, %18, %cst_16 {dimension_numbers = #tpu.dot_dimension_numbers<[1], [0], [0], [1], [0, 0, 1, 1], [], []>} : vector<1x128xf32>, vector<128x64xf32>, vector<1x64xf32> -> vector<1x64xf32>
    %28 = vector.broadcast %cst_14 : f32 to vector<1x64xf32>
    %29 = arith.maximumf %27, %28 : vector<1x64xf32>
    %30 = tpu.reciprocal %29 {approx = true} : vector<1x64xf32> -> vector<1x64xf32>
    %c1_i32 = arith.constant 1 : i32
    %cst_17 = arith.constant dense<0.000000e+00> : vector<1x128xf32>
    %31 = tpu.matmul %30, %18, %cst_17 {dimension_numbers = #tpu.dot_dimension_numbers<[1], [1], [0], [0], [0, 0, 1, 0], [], []>} : vector<1x64xf32>, vector<128x64xf32>, vector<1x128xf32> -> vector<1x128xf32>
    %32 = vector.broadcast %cst_14 : f32 to vector<1x128xf32>
    %33 = arith.maximumf %31, %32 : vector<1x128xf32>
    %34 = tpu.reciprocal %33 {approx = true} : vector<1x128xf32> -> vector<1x128xf32>
    %35 = vector.broadcast %19 : f32 to vector<1x128xf32>
    %36 = arith.mulf %35, %34 : vector<1x128xf32>
    %cst_18 = arith.constant dense<0.000000e+00> : vector<1x64xf32>
    %37 = tpu.matmul %36, %18, %cst_18 {dimension_numbers = #tpu.dot_dimension_numbers<[1], [0], [0], [1], [0, 0, 1, 1], [], []>} : vector<1x128xf32>, vector<128x64xf32>, vector<1x64xf32> -> vector<1x64xf32>
    %38 = vector.broadcast %cst_14 : f32 to vector<1x64xf32>
    %39 = arith.maximumf %37, %38 : vector<1x64xf32>
    %40 = tpu.reciprocal %39 {approx = true} : vector<1x64xf32> -> vector<1x64xf32>
    %c2_i32 = arith.constant 2 : i32
    %cst_19 = arith.constant dense<0.000000e+00> : vector<1x128xf32>
    %41 = tpu.matmul %40, %18, %cst_19 {dimension_numbers = #tpu.dot_dimension_numbers<[1], [1], [0], [0], [0, 0, 1, 0], [], []>} : vector<1x64xf32>, vector<128x64xf32>, vector<1x128xf32> -> vector<1x128xf32>
    %42 = vector.broadcast %cst_14 : f32 to vector<1x128xf32>
    %43 = arith.maximumf %41, %42 : vector<1x128xf32>
    %44 = tpu.reciprocal %43 {approx = true} : vector<1x128xf32> -> vector<1x128xf32>
    %45 = vector.broadcast %19 : f32 to vector<1x128xf32>
    %46 = arith.mulf %45, %44 : vector<1x128xf32>
    %cst_20 = arith.constant dense<0.000000e+00> : vector<1x64xf32>
    %47 = tpu.matmul %46, %18, %cst_20 {dimension_numbers = #tpu.dot_dimension_numbers<[1], [0], [0], [1], [0, 0, 1, 1], [], []>} : vector<1x128xf32>, vector<128x64xf32>, vector<1x64xf32> -> vector<1x64xf32>
    %48 = vector.broadcast %cst_14 : f32 to vector<1x64xf32>
    %49 = arith.maximumf %47, %48 : vector<1x64xf32>
    %50 = tpu.reciprocal %49 {approx = true} : vector<1x64xf32> -> vector<1x64xf32>
    %c3_i32 = arith.constant 3 : i32
    %cst_21 = arith.constant dense<0.000000e+00> : vector<1x128xf32>
    %51 = tpu.matmul %50, %18, %cst_21 {dimension_numbers = #tpu.dot_dimension_numbers<[1], [1], [0], [0], [0, 0, 1, 0], [], []>} : vector<1x64xf32>, vector<128x64xf32>, vector<1x128xf32> -> vector<1x128xf32>
    %52 = vector.broadcast %cst_14 : f32 to vector<1x128xf32>
    %53 = arith.maximumf %51, %52 : vector<1x128xf32>
    %54 = tpu.reciprocal %53 {approx = true} : vector<1x128xf32> -> vector<1x128xf32>
    %55 = vector.broadcast %19 : f32 to vector<1x128xf32>
    %56 = arith.mulf %55, %54 : vector<1x128xf32>
    %cst_22 = arith.constant dense<0.000000e+00> : vector<1x64xf32>
    %57 = tpu.matmul %56, %18, %cst_22 {dimension_numbers = #tpu.dot_dimension_numbers<[1], [0], [0], [1], [0, 0, 1, 1], [], []>} : vector<1x128xf32>, vector<128x64xf32>, vector<1x64xf32> -> vector<1x64xf32>
    %58 = vector.broadcast %cst_14 : f32 to vector<1x64xf32>
    %59 = arith.maximumf %57, %58 : vector<1x64xf32>
    %60 = tpu.reciprocal %59 {approx = true} : vector<1x64xf32> -> vector<1x64xf32>
    %c4_i32 = arith.constant 4 : i32
    %cst_23 = arith.constant dense<0.000000e+00> : vector<1x128xf32>
    %61 = tpu.matmul %60, %18, %cst_23 {dimension_numbers = #tpu.dot_dimension_numbers<[1], [1], [0], [0], [0, 0, 1, 0], [], []>} : vector<1x64xf32>, vector<128x64xf32>, vector<1x128xf32> -> vector<1x128xf32>
    %62 = vector.broadcast %cst_14 : f32 to vector<1x128xf32>
    %63 = arith.maximumf %61, %62 : vector<1x128xf32>
    %64 = tpu.reciprocal %63 {approx = true} : vector<1x128xf32> -> vector<1x128xf32>
    %65 = vector.broadcast %19 : f32 to vector<1x128xf32>
    %66 = arith.mulf %65, %64 : vector<1x128xf32>
    %cst_24 = arith.constant dense<0.000000e+00> : vector<1x64xf32>
    %67 = tpu.matmul %66, %18, %cst_24 {dimension_numbers = #tpu.dot_dimension_numbers<[1], [0], [0], [1], [0, 0, 1, 1], [], []>} : vector<1x128xf32>, vector<128x64xf32>, vector<1x64xf32> -> vector<1x64xf32>
    %68 = vector.broadcast %cst_14 : f32 to vector<1x64xf32>
    %69 = arith.maximumf %67, %68 : vector<1x64xf32>
    %70 = tpu.reciprocal %69 {approx = true} : vector<1x64xf32> -> vector<1x64xf32>
    %c5_i32 = arith.constant 5 : i32
    %cst_25 = arith.constant dense<0.000000e+00> : vector<1x128xf32>
    %71 = tpu.matmul %70, %18, %cst_25 {dimension_numbers = #tpu.dot_dimension_numbers<[1], [1], [0], [0], [0, 0, 1, 0], [], []>} : vector<1x64xf32>, vector<128x64xf32>, vector<1x128xf32> -> vector<1x128xf32>
    %72 = vector.broadcast %cst_14 : f32 to vector<1x128xf32>
    %73 = arith.maximumf %71, %72 : vector<1x128xf32>
    %74 = tpu.reciprocal %73 {approx = true} : vector<1x128xf32> -> vector<1x128xf32>
    %75 = vector.broadcast %19 : f32 to vector<1x128xf32>
    %76 = arith.mulf %75, %74 : vector<1x128xf32>
    %cst_26 = arith.constant dense<0.000000e+00> : vector<1x64xf32>
    %77 = tpu.matmul %76, %18, %cst_26 {dimension_numbers = #tpu.dot_dimension_numbers<[1], [0], [0], [1], [0, 0, 1, 1], [], []>} : vector<1x128xf32>, vector<128x64xf32>, vector<1x64xf32> -> vector<1x64xf32>
    %78 = vector.broadcast %cst_14 : f32 to vector<1x64xf32>
    %79 = arith.maximumf %77, %78 : vector<1x64xf32>
    %80 = tpu.reciprocal %79 {approx = true} : vector<1x64xf32> -> vector<1x64xf32>
    %c6_i32 = arith.constant 6 : i32
    %cst_27 = arith.constant dense<0.000000e+00> : vector<1x128xf32>
    %81 = tpu.matmul %80, %18, %cst_27 {dimension_numbers = #tpu.dot_dimension_numbers<[1], [1], [0], [0], [0, 0, 1, 0], [], []>} : vector<1x64xf32>, vector<128x64xf32>, vector<1x128xf32> -> vector<1x128xf32>
    %82 = vector.broadcast %cst_14 : f32 to vector<1x128xf32>
    %83 = arith.maximumf %81, %82 : vector<1x128xf32>
    %84 = tpu.reciprocal %83 {approx = true} : vector<1x128xf32> -> vector<1x128xf32>
    %85 = vector.broadcast %19 : f32 to vector<1x128xf32>
    %86 = arith.mulf %85, %84 : vector<1x128xf32>
    %cst_28 = arith.constant dense<0.000000e+00> : vector<1x64xf32>
    %87 = tpu.matmul %86, %18, %cst_28 {dimension_numbers = #tpu.dot_dimension_numbers<[1], [0], [0], [1], [0, 0, 1, 1], [], []>} : vector<1x128xf32>, vector<128x64xf32>, vector<1x64xf32> -> vector<1x64xf32>
    %88 = vector.broadcast %cst_14 : f32 to vector<1x64xf32>
    %89 = arith.maximumf %87, %88 : vector<1x64xf32>
    %90 = tpu.reciprocal %89 {approx = true} : vector<1x64xf32> -> vector<1x64xf32>
    %c7_i32 = arith.constant 7 : i32
    %cst_29 = arith.constant dense<0.000000e+00> : vector<1x128xf32>
    %91 = tpu.matmul %90, %18, %cst_29 {dimension_numbers = #tpu.dot_dimension_numbers<[1], [1], [0], [0], [0, 0, 1, 0], [], []>} : vector<1x64xf32>, vector<128x64xf32>, vector<1x128xf32> -> vector<1x128xf32>
    %92 = vector.broadcast %cst_14 : f32 to vector<1x128xf32>
    %93 = arith.maximumf %91, %92 : vector<1x128xf32>
    %94 = tpu.reciprocal %93 {approx = true} : vector<1x128xf32> -> vector<1x128xf32>
    %95 = vector.broadcast %19 : f32 to vector<1x128xf32>
    %96 = arith.mulf %95, %94 : vector<1x128xf32>
    %cst_30 = arith.constant dense<0.000000e+00> : vector<1x64xf32>
    %97 = tpu.matmul %96, %18, %cst_30 {dimension_numbers = #tpu.dot_dimension_numbers<[1], [0], [0], [1], [0, 0, 1, 1], [], []>} : vector<1x128xf32>, vector<128x64xf32>, vector<1x64xf32> -> vector<1x64xf32>
    %98 = vector.broadcast %cst_14 : f32 to vector<1x64xf32>
    %99 = arith.maximumf %97, %98 : vector<1x64xf32>
    %100 = tpu.reciprocal %99 {approx = true} : vector<1x64xf32> -> vector<1x64xf32>
    %c8_i32 = arith.constant 8 : i32
    %cst_31 = arith.constant dense<0.000000e+00> : vector<1x128xf32>
    %101 = tpu.matmul %100, %18, %cst_31 {dimension_numbers = #tpu.dot_dimension_numbers<[1], [1], [0], [0], [0, 0, 1, 0], [], []>} : vector<1x64xf32>, vector<128x64xf32>, vector<1x128xf32> -> vector<1x128xf32>
    %102 = vector.broadcast %cst_14 : f32 to vector<1x128xf32>
    %103 = arith.maximumf %101, %102 : vector<1x128xf32>
    %104 = tpu.reciprocal %103 {approx = true} : vector<1x128xf32> -> vector<1x128xf32>
    %105 = vector.broadcast %19 : f32 to vector<1x128xf32>
    %106 = arith.mulf %105, %104 : vector<1x128xf32>
    %cst_32 = arith.constant dense<0.000000e+00> : vector<1x64xf32>
    %107 = tpu.matmul %106, %18, %cst_32 {dimension_numbers = #tpu.dot_dimension_numbers<[1], [0], [0], [1], [0, 0, 1, 1], [], []>} : vector<1x128xf32>, vector<128x64xf32>, vector<1x64xf32> -> vector<1x64xf32>
    %108 = vector.broadcast %cst_14 : f32 to vector<1x64xf32>
    %109 = arith.maximumf %107, %108 : vector<1x64xf32>
    %110 = tpu.reciprocal %109 {approx = true} : vector<1x64xf32> -> vector<1x64xf32>
    %c9_i32 = arith.constant 9 : i32
    %cst_33 = arith.constant dense<0.000000e+00> : vector<1x128xf32>
    %111 = tpu.matmul %110, %18, %cst_33 {dimension_numbers = #tpu.dot_dimension_numbers<[1], [1], [0], [0], [0, 0, 1, 0], [], []>} : vector<1x64xf32>, vector<128x64xf32>, vector<1x128xf32> -> vector<1x128xf32>
    %112 = vector.broadcast %cst_14 : f32 to vector<1x128xf32>
    %113 = arith.maximumf %111, %112 : vector<1x128xf32>
    %114 = tpu.reciprocal %113 {approx = true} : vector<1x128xf32> -> vector<1x128xf32>
    %115 = vector.broadcast %19 : f32 to vector<1x128xf32>
    %116 = arith.mulf %115, %114 : vector<1x128xf32>
    %cst_34 = arith.constant dense<0.000000e+00> : vector<1x64xf32>
    %117 = tpu.matmul %116, %18, %cst_34 {dimension_numbers = #tpu.dot_dimension_numbers<[1], [0], [0], [1], [0, 0, 1, 1], [], []>} : vector<1x128xf32>, vector<128x64xf32>, vector<1x64xf32> -> vector<1x64xf32>
    %118 = vector.broadcast %cst_14 : f32 to vector<1x64xf32>
    %119 = arith.maximumf %117, %118 : vector<1x64xf32>
    %120 = tpu.reciprocal %119 {approx = true} : vector<1x64xf32> -> vector<1x64xf32>
    %cst_35 = arith.constant dense<0.000000e+00> : vector<128x1xf32>
    %121 = tpu.matmul %18, %110, %cst_35 {dimension_numbers = #tpu.dot_dimension_numbers<[1], [1], [0], [0], [0, 0, 1, 0], [], []>} : vector<128x64xf32>, vector<1x64xf32>, vector<128x1xf32> -> vector<128x1xf32>
    %cst_36 = arith.constant 1.000000e-35 : f32
    %122 = vector.broadcast %cst_36 : f32 to vector<128x1xf32>
    %123 = arith.maximumf %121, %122 : vector<128x1xf32>
    %124 = tpu.reciprocal %123 {approx = true} : vector<128x1xf32> -> vector<128x1xf32>
    %125 = vector.broadcast %19 : f32 to vector<128x1xf32>
    %126 = arith.mulf %125, %124 : vector<128x1xf32>
    %127 = vector.broadcast %120 : vector<1x64xf32> to vector<128x64xf32>
    %128 = arith.mulf %18, %127 : vector<128x64xf32>
    %cst_37 = arith.constant dense<0.000000e+00> : vector<128x128xf32>
    %129 = tpu.matmul %128, %3, %cst_37 {dimension_numbers = #tpu.dot_dimension_numbers<[1], [0], [0], [1], [0, 0, 1, 1], [], []>} : vector<128x64xf32>, vector<64x128xf32>, vector<128x128xf32> -> vector<128x128xf32>
    %130 = vector.broadcast %126 : vector<128x1xf32> to vector<128x128xf32>
    %131 = arith.mulf %130, %129 : vector<128x128xf32>
    %c0_38 = arith.constant 0 : index
    %c0_39 = arith.constant 0 : index
    %c0_40 = arith.constant 0 : index
    %132 = vector.load %arg4[%c0_38, %c0_39, %c0_40] : memref<1x128x128xf32, #tpu.memory_space<vmem>>, vector<1x128x128xf32>
    %133 = vector.shape_cast %132 : vector<1x128x128xf32> to vector<128x128xf32>
    %134 = vector.shape_cast %131 : vector<128x128xf32> to vector<1x128x128xf32>
    tpu.vector_store %arg4[%c0_38, %c0_39, %c0_40], %134 {strides = array<i32>} : memref<1x128x128xf32, #tpu.memory_space<vmem>>, vector<1x128x128xf32>,
    return
  }
  func.func @transform_0(%arg0: i32) -> (i32, i32, i32) {
    %c0_i32 = arith.constant 0 : i32
    %c0_i32_0 = arith.constant 0 : i32
    %c0_i32_1 = arith.constant 0 : i32
    return %arg0, %c0_i32, %c0_i32_0 : i32, i32, i32
  }
  func.func @transform_1(%arg0: i32) -> (i32, i32, i32) {
    %c0_i32 = arith.constant 0 : i32
    %c0_i32_0 = arith.constant 0 : i32
    %c0_i32_1 = arith.constant 0 : i32
    return %arg0, %c0_i32, %c0_i32_0 : i32, i32, i32
  }
  func.func @transform_2(%arg0: i32) -> (i32, i32, i32) {
    %c0_i32 = arith.constant 0 : i32
    %c0_i32_0 = arith.constant 0 : i32
    %c0_i32_1 = arith.constant 0 : i32
    return %arg0, %c0_i32, %c0_i32_0 : i32, i32, i32
  }
  func.func @transform_3(%arg0: i32) -> (i32, i32, i32) {
    %c0_i32 = arith.constant 0 : i32
    %c0_i32_0 = arith.constant 0 : i32
    %c0_i32_1 = arith.constant 0 : i32
    return %arg0, %c0_i32, %c0_i32_0 : i32, i32, i32
  }
}

</mosaic_0001>

<bundles_post_ra>
// kernel: tpu_custom_call.1
= control target key start
LH: loop header
LB: loop body
LE: loop exit
PB: predicated region body
PF: predicated region fallthrough
CT: control target
= control target key end

     0   :  { %8 = vsyncpa [#allocation3], 0  ;;  %s5606_s0 = inlined_call_operand.vmem [shape: f32[2,128,128], index: 0, kind: input, shape index: {}]   ;;  %s5607_s1 = inlined_call_operand.vmem [shape: f32[2,64,128], index: 1, kind: input, shape index: {}]   ;;  %s5608_s2 = inlined_call_operand.vmem [shape: f32[2,128,64], index: 2, kind: input, shape index: {}]   ;;  %s5609_s3 = inlined_call_operand.hbm [shape: f32[2,128,128], index: 3, kind: output, shape index: {}]  }
   0x1   :  { %10 = vsyncpa [#allocation3 + $0x1], 0  ;;  %s4655_s12 = smov 0   ;;  %s4657_s13 = smov 0  }
   0x2   :  { %s4659_s14 = smov 0   ;;  %s4661_s15 = smov 0  }
   0x3 LB: > { %s4676_s16 = sadd.s32 4294967295, %s4626_s15   ;;  %s2493_s17 = sadd.s32 4294967294, %s4626_s15   ;;  %s4626_s15 = sphi %s4661_s15, %s5617_s15   ;;  %s4622_s14 = sphi %s4659_s14, %s5616_s14   ;;  %s4618_s13 = sphi %s4657_s13, %s5615_s13   ;;  %s4614_s12 = sphi %s4655_s12, %s5614_s12  }
   0x4   : > { %s4680_s18 = sadd.s32 1, %s4626_s15   ;;  %s101_s19 = sadd.s32 1, %s4622_s14 }
   0x5   : > { %s98_s20 = ssub.s32 %s4626_s15, %s4680_s18  ;;  %p111_p0 = scmp.ne.s32.totalorder %s4622_s14, %s4618_s13 }
   0x6   : > { %p99_p1 = scmp.eq.s32.totalorder %s98_s20, 0  ;;  %p112_p2 = scmp.eq.s32.totalorder %s4676_s16, 1 }
   0x7   : > { %p117_p3 = scmp.ne.s32.totalorder %s4618_s13, %s4614_s12  ;;  %p118_p4 = scmp.eq.s32.totalorder %s2493_s17, 1 }
   0x8   : > { %s4691_s21 = scalar_select %p99_p1, %s4622_s14, %s101_s19  }
   0x9   : > { %p4693_p5 = por %p112_p2, %p111_p0  ;;  %p4697_p6 = por %p118_p4, %p117_p3 }
   0xa   : > { %p2496_p7 = scmp.ge.s32.totalorder %s4626_s15, 1  ;;  %p160_p8 = scmp.lt.s32.totalorder %s4626_s15, 3 }
   0xc   : > { %p161_p9 = pnand %p2496_p7, %p160_p8 }
   0xd   : > { %p194_p10 = scmp.lt.s32.totalorder (!%p161_p9), %s4676_s16, 1  ;;  %vm407_vm0 = vcmask (!%p161_p9), 523264   ;;  %vm4629_vm1 = vmmov (!%p161_p9), 0   ;;  %s191_s9 = sand.u32 (!%p161_p9), 1, %s4618_s13  }
   0xe   : > { %164 = sbr.rel (%p161_p9) target bundleno = 5285 (0x14a5), region = 32  ;;  %vm4860_vm2 = vmpackc.low (!%p161_p9), %vm407_vm0, %vm407_vm0  ;;  %s2497_s10 = sshll.u32 (!%p161_p9), %s191_s9, 7 }
   0xf   : > { %s5536_s11 = scalar_lea.vmem (!%p161_p9), [#allocation2], %s2497_s10  ;;  %s2698_s17 = sshll.u32 (!%p161_p9), %s4676_s16, 11 }
  0x10   : > { %s2407_s19 = sshll.u32 (!%p161_p9), %s5536_s11, 4  ;;  %s4632_s27 = smov (!%p161_p9), [#allocation2]   ;;  %s5559_s19 = int_to_ptr.vmem [resolvable:$true] %s2407_s19 }
  0x11   : > { %s4568_s28 = sshll.u32 (!%p161_p9), %s4632_s27, 4  ;;  %s4569_s28 = int_to_ptr.vmem [resolvable:$false] %s4568_s28 }
  0x12   : > { %p4571_p0 = scmp.lt.s32.totalorder (!%p161_p9), %s5559_s19, %s4569_s28 }
  0x15   : > { %s4705_s24 = scalar_select %p194_p10, %s4676_s16, 1 }
  0x16   : > { %s5565_s16 = scalar_lea.sflag [#allocation3], %s191_s9 }
  0x17   : > { %s2695_s25 = sshll.u32 %s4705_s24, 7  ;;  %s2696_s26 = sshll.u32 %s4705_s24, 6 }
  0x18   : > { %s4714_s29 = scalar_lea.vmem %s5606_s0, %s2695_s25  ;;  %s203_s5 = scalar_lea.vmem %s5607_s1, %s2696_s26 }
  0x19   : > { %v226_v0 = vld [vmem:[%s203_s5] sm:$0xff]  ;;  %v227_v1 = vld [vmem:[%s203_s5 + $0x8] sm:$0xff]  ;;  %v228_v2 = vld [vmem:[%s203_s5 + $0x10] sm:$0xff]  ;;  %s4756_s8 = scalar_lea.vmem %s5608_s2, %s2695_s25  ;;  %s5557_s25 = scalar_lea.hbm %s5609_s3, %s2698_s17 }
  0x1a   : > { %v4719_v3 = vpack.c.bf16 %v227_v1, %v226_v0  ;;  %v229_v4 = vld [vmem:[%s203_s5 + $0x18] sm:$0xff]  ;;  %v210_v6 = vld [vmem:[%s4714_s29] sm:$0xff]  ;;  %v211_v7 = vld [vmem:[%s4714_s29 + $0x8] sm:$0xff]  ;;  %s4564_s26 = scalar_lea.vmem %s5559_s19, 2048 }
  0x1b   : > { %v4721_v5 = vpack.c.bf16 %v229_v4, %v228_v2  ;;  %v250_v8 = vmul.f32 0.8838835, %v210_v6  ;;  %v251_v9 = vmul.f32 0.8838835, %v211_v7  ;;  %v230_v10 = vld [vmem:[%s203_s5 + $0x20] sm:$0xff]  ;;  %v231_v11 = vld [vmem:[%s203_s5 + $0x28] sm:$0xff]  ;;  %p4565_p11 = scmp.ne.s32.totalorder %s5559_s19, %s4564_s26 }
  0x1c   : > { %3075 = vmatprep.subr.bf16.mxu0 %v4719_v3  ;;  %v4728_v13 = vpack.c.bf16 %v231_v11, %v230_v10  ;;  %v232_v14 = vld [vmem:[%s203_s5 + $0x30] sm:$0xff]  ;;  %v233_v15 = vld [vmem:[%s203_s5 + $0x38] sm:$0xff]  ;;  %v214_v19 = vld [vmem:[%s4714_s29 + $0x20] sm:$0xff] }
  0x1d   : > { %3076 = vmatpush3.bf16.xpose.msra.mxu0 %v4719_v3  ;;  %v266_v12 = vpack.c.bf16 %v251_v9, %v250_v8  ;;  %v4732_v16 = vpack.c.bf16 %v233_v15, %v232_v14  ;;  %v212_v17 = vld [vmem:[%s4714_s29 + $0x10] sm:$0xff]  ;;  %v213_v18 = vld [vmem:[%s4714_s29 + $0x18] sm:$0xff]  ;;  %v215_v20 = vld [vmem:[%s4714_s29 + $0x28] sm:$0xff]  ;;  %v254_v23 = vmul.f32 0.8838835, %v214_v19  ;;  %p4566_p12 = pnand %p4565_p11, %p4693_p5 }
  0x1e   : > { %3077 = vmatprep.subr.bf16.mxu0 %v4721_v5  ;;  %v252_v21 = vmul.f32 0.8838835, %v212_v17  ;;  %v253_v22 = vmul.f32 0.8838835, %v213_v18  ;;  %v255_v24 = vmul.f32 0.8838835, %v215_v20 }
  0x1f   : > { %3083 = vmatprep.mubr.bf16.mxu0 %v266_v12  ;;  %v216_v27 = vld [vmem:[%s4714_s29 + $0x30] sm:$0xff]  ;;  %v217_v28 = vld [vmem:[%s4714_s29 + $0x38] sm:$0xff]  ;;  %v218_v29 = vld [vmem:[%s4714_s29 + $0x40] sm:$0xff]  ;;  %p4567_p13 = pneg %p4566_p12 }
  0x20   : > { %v267_v25 = vpack.c.bf16 %v253_v22, %v252_v21  ;;  %v268_v26 = vpack.c.bf16 %v255_v24, %v254_v23  ;;  %v219_v30 = vld [vmem:[%s4714_s29 + $0x48] sm:$0xff]  ;;  %v256_v31 = vmul.f32 0.8838835, %v216_v27  ;;  %v257_v32 = vmul.f32 0.8838835, %v217_v28  ;;  %v220_v37 = vld [vmem:[%s4714_s29 + $0x50] sm:$0xff] }
  0x21   : > { %v258_v33 = vmul.f32 0.8838835, %v218_v29  ;;  %v259_v34 = vmul.f32 0.8838835, %v219_v30  ;;  %v221_v38 = vld [vmem:[%s4714_s29 + $0x58] sm:$0xff]  ;;  %v222_v39 = vld [vmem:[%s4714_s29 + $0x60] sm:$0xff] }
  0x22   : > { %v269_v35 = vpack.c.bf16 %v257_v32, %v256_v31  ;;  %v223_v40 = vld [vmem:[%s4714_s29 + $0x68] sm:$0xff]  ;;  %v260_v41 = vmul.f32 0.8838835, %v220_v37  ;;  %v261_v42 = vmul.f32 0.8838835, %v221_v38  ;;  %v224_v47 = vld [vmem:[%s4714_s29 + $0x70] sm:$0xff] }
  0x23   : > { %v270_v36 = vpack.c.bf16 %v259_v34, %v258_v33  ;;  %v262_v43 = vmul.f32 0.8838835, %v222_v39  ;;  %v263_v44 = vmul.f32 0.8838835, %v223_v40  ;;  %v225_v48 = vld [vmem:[%s4714_s29 + $0x78] sm:$0xff]  ;;  %v236_v52 = vld [vmem:[%s4756_s8 + $0x10] sm:$0xff] }
  0x24   : > { %v271_v45 = vpack.c.bf16 %v261_v42, %v260_v41  ;;  %v264_v49 = vmul.f32 0.8838835, %v224_v47  ;;  %v265_v50 = vmul.f32 0.8838835, %v225_v48  ;;  %v234_v53 = vld [vmem:[%s4756_s8] sm:$0xff]  ;;  %v237_v54 = vld [vmem:[%s4756_s8 + $0x18] sm:$0xff] }
  0x25   : > { %3078 = vmatpush3.bf16.xpose.msra.mxu0 %v4721_v5  ;;  %v272_v46 = vpack.c.bf16 %v263_v44, %v262_v43  ;;  %v377_v55 = vmul.f32 10.0, %v236_v52  ;;  %v235_v56 = vld [vmem:[%s4756_s8 + $0x8] sm:$0xff]  ;;  %v375_v57 = vmul.f32 10.0, %v234_v53  ;;  %v378_v58 = vmul.f32 10.0, %v237_v54  ;;  %v240_v1 = vld [vmem:[%s4756_s8 + $0x30] sm:$0xff]  ;;  %v238_v7 = vld [vmem:[%s4756_s8 + $0x20] sm:$0xff] }
  0x26   : > { %3079 = vmatprep.subr.bf16.mxu0 %v4728_v13  ;;  %v273_v51 = vpack.c.bf16 %v265_v50, %v264_v49  ;;  %v376_v60 = vmul.f32 10.0, %v235_v56  ;;  %v241_v10 = vld [vmem:[%s4756_s8 + $0x38] sm:$0xff]  ;;  %v381_v11 = vmul.f32 10.0, %v240_v1  ;;  %v239_v12 = vld [vmem:[%s4756_s8 + $0x28] sm:$0xff]  ;;  %v379_v14 = vmul.f32 10.0, %v238_v7  ;;  %v242_v28 = vld [vmem:[%s4756_s8 + $0x40] sm:$0xff] }
  0x27   : > { %v382_v17 = vmul.f32 10.0, %v241_v10  ;;  %v380_v20 = vmul.f32 10.0, %v239_v12  ;;  %v245_v31 = vld [vmem:[%s4756_s8 + $0x58] sm:$0xff]  ;;  %v243_v33 = vld [vmem:[%s4756_s8 + $0x48] sm:$0xff]  ;;  %v246_v48 = vld [vmem:[%s4756_s8 + $0x60] sm:$0xff]  ;;  %s4570_s29 = scalar_lea.vmem %s4569_s28, 4096 }
  0x28   : > { %v386_v37 = vmul.f32 10.0, %v245_v31  ;;  %v384_v40 = vmul.f32 10.0, %v243_v33  ;;  %v247_v53 = vld [vmem:[%s4756_s8 + $0x68] sm:$0xff]  ;;  %v387_v56 = vmul.f32 10.0, %v246_v48  ;;  %p4572_p1 = scmp.lt.s32.totalorder %s4570_s29, %s4564_s26 }
  0x2a   : > { %p4573_p2 = por %p4572_p1, %p4571_p0 }
  0x2c   : > { %p4574_p3 = pnand %p4573_p2, %p4567_p13 }
  0x2d   : > { %3080 = vmatpush3.bf16.xpose.msra.mxu0 %v4728_v13 }
  0x2e   : > { %3081 = vmatprep.subr.bf16.mxu0 %v4732_v16 }
  0x35   : > { %3082 = vmatpush3.bf16.xpose.msra.mxu0 %v4732_v16 }
  0x3c   : > { %3084 = vmatmul.mubr.bf16.vlgmr.msra.gmra.mrb[0].mxu0 %v267_v25  ;;  %v244_v25 = vld [vmem:[%s4756_s8 + $0x50] sm:$0xff] }
  0x3d   : > { %3087 = vmatprep.mubr.bf16.mxu0 %v268_v26  ;;  %v385_v32 = vmul.f32 10.0, %v244_v25 }
  0x44   : > { %3088 = vmatmul.mubr.bf16.gmra.mrb[4].mxu0 %v269_v35 }
  0x45   : > { %3091 = vmatprep.mubr.bf16.mxu0 %v270_v36  ;;  %v383_v36 = vmul.f32 10.0, %v242_v28 }
  0x4c   : > { %3092 = vmatmul.mubr.bf16.gmra.mrb[8].mxu0 %v271_v45  ;;  %v248_v45 = vld [vmem:[%s4756_s8 + $0x70] sm:$0xff] }
  0x4d   : > { %3095 = vmatprep.mubr.bf16.mxu0 %v272_v46  ;;  %v389_v52 = vmul.f32 10.0, %v248_v45 }
  0x54   : > { %3096 = vmatmul.mubr.bf16.gmra.mrb[12].mxu0 %v273_v51  ;;  %v249_v51 = vld [vmem:[%s4756_s8 + $0x78] sm:$0xff] }
 0x10f   : > { %v3085_v59 = vpop.f32.mrb[0].mxu0 }
 0x110   : > { %v4762_v61 = vsub.f32 %v3085_v59, %v377_v55  ;;  %v312_v62 = vpop.f32.mrb[1].mxu0 }
 0x111   : > { %v4764_v63 = vsub.f32 %v312_v62, %v375_v57  ;;  %v3086_v0 = vpop.f32.mrb[2].mxu0  ;;  %v390_v57 = vmul.f32 10.0, %v249_v51 }
 0x112   : > { %v4767_v2 = vsub.f32 %v3086_v0, %v378_v58  ;;  %v315_v4 = vpop.f32.mrb[3].mxu0  ;;  %v414_v6 = vsel %vm407_vm0, %v4762_v61, -inf }
 0x113   : > { %v4772_v8 = vsub.f32 %v315_v4, %v376_v60  ;;  %415 = vmax.xlane.f32.xlu1 %v414_v6  ;;  %v408_v9 = vsel %vm407_vm0, %v4764_v63, -inf  ;;  %v388_v60 = vmul.f32 10.0, %v247_v53 }
 0x114   : > { %409 = vmax.xlane.f32.xlu0 %v408_v9  ;;  %v417_v15 = vsel %vm407_vm0, %v4767_v2, -inf }
 0x115   : > { %v411_v19 = vsel %vm407_vm0, %v4772_v8, -inf }
 0x117   : > { %418 = vmax.xlane.f32.xlu1 %v417_v15  ;;  %v3089_v18 = vpop.f32.mrb[4].mxu0  ;;  %v4628_v15 = vmov 0.0|0.0  }
 0x118   : > { %v4782_v21 = vsub.f32 %v3089_v18, %v381_v11  ;;  %412 = vmax.xlane.f32.xlu0 %v411_v19  ;;  %v328_v22 = vpop.f32.mrb[5].mxu0  ;;  %3839 = vmatprep.subr.bf16.mxu1 %v4628_v15 }
 0x119   : > { %v4784_v23 = vsub.f32 %v328_v22, %v379_v14  ;;  %v3090_v24 = vpop.f32.mrb[6].mxu0  ;;  %3871 = vmatprep.subr.bf16.mxu0 %v4628_v15 }
 0x11a   : > { %v4787_v26 = vsub.f32 %v3090_v24, %v382_v17  ;;  %v331_v27 = vpop.f32.mrb[7].mxu0  ;;  %v426_v35 = vsel %vm407_vm0, %v4782_v21, -inf  ;;  %v4630_v17 = vmov 0.0  }
 0x11b   : > { %v4790_v29 = vsub.f32 %v331_v27, %v380_v20  ;;  %v420_v30 = vsel %vm407_vm0, %v4784_v23, -inf  ;;  %3131 = vmatprep.mubr.msk.f32.mxu1 %vm4629_vm1, %v4630_v17  ;;  %3166 = vmatprep.mubr.msk.f32.mxu0 %vm4629_vm1, %v4630_v17 }
 0x11c   : > { %421 = vmax.xlane.f32.xlu0 %v420_v30  ;;  %v429_v39 = vsel %vm407_vm0, %v4787_v26, -inf }
 0x11d   : > { %v423_v34 = vsel %vm407_vm0, %v4790_v29, -inf }
 0x11e   : > { %424 = vmax.xlane.f32.xlu1 %v423_v34 }
 0x11f   : > { %v3093_v38 = vpop.f32.mrb[8].mxu0 }
 0x120   : > { %v4802_v41 = vsub.f32 %v3093_v38, %v385_v32  ;;  %427 = vmax.xlane.f32.xlu0 %v426_v35  ;;  %v344_v42 = vpop.f32.mrb[9].mxu0 }
 0x121   : > { %v4804_v43 = vsub.f32 %v344_v42, %v383_v36  ;;  %v3094_v44 = vpop.f32.mrb[10].mxu0 }
 0x122   : > { %v4807_v46 = vsub.f32 %v3094_v44, %v386_v37  ;;  %430 = vmax.xlane.f32.xlu1 %v429_v39  ;;  %v347_v47 = vpop.f32.mrb[11].mxu0  ;;  %v438_v55 = vsel %vm407_vm0, %v4802_v41, -inf }
 0x123   : > { %v4810_v49 = vsub.f32 %v347_v47, %v384_v40  ;;  %v432_v50 = vsel %vm407_vm0, %v4804_v43, -inf }
 0x124   : > { %433 = vmax.xlane.f32.xlu0 %v432_v50  ;;  %v441_v59 = vsel %vm407_vm0, %v4807_v46, -inf }
 0x125   : > { %v435_v54 = vsel %vm407_vm0, %v4810_v49, -inf }
 0x126   : > { %436 = vmax.xlane.f32.xlu1 %v435_v54 }
 0x127   : > { %v3097_v58 = vpop.f32.mrb[12].mxu0 }
 0x128   : > { %v4822_v62 = vsub.f32 %v3097_v58, %v389_v52  ;;  %439 = vmax.xlane.f32.xlu0 %v438_v55  ;;  %v360_v0 = vpop.f32.mrb[13].mxu0 }
 0x129   : > { %v4824_v1 = vsub.f32 %v360_v0, %v387_v56  ;;  %v3098_v4 = vpop.f32.mrb[14].mxu0 }
 0x12a   : > { %v4826_v6 = vsub.f32 %v3098_v4, %v390_v57  ;;  %442 = vmax.xlane.f32.xlu1 %v441_v59  ;;  %v363_v7 = vpop.f32.mrb[15].mxu0  ;;  %v450_v12 = vsel %vm407_vm0, %v4822_v62, -inf }
 0x12b   : > { %v4828_v9 = vsub.f32 %v363_v7, %v388_v60  ;;  %v444_v10 = vsel %vm407_vm0, %v4824_v1, -inf }
 0x12c   : > { %445 = vmax.xlane.f32.xlu0 %v444_v10  ;;  %v453_v14 = vsel %vm407_vm0, %v4826_v6, -inf }
 0x12d   : > { %v447_v11 = vsel %vm407_vm0, %v4828_v9, -inf }
 0x12e   : > { %448 = vmax.xlane.f32.xlu1 %v447_v11 }
 0x130   : > { %451 = vmax.xlane.f32.xlu0 %v450_v12 }
 0x132   : > { %454 = vmax.xlane.f32.xlu1 %v453_v14 }
 0x1a0   : > { %v416_v18 = vpop.xlane.xlu1 %415 }
 0x1a1   : > { %v410_v19 = vpop.xlane.xlu0 %409  ;;  %v458_v28 = vsub.f32 %v4762_v61, %v416_v18 }
 0x1a2   : > { %v456_v20 = vsub.f32 %v4764_v63, %v410_v19 }
 0x1a3   : > { %v476_v34 = vmul.f32 1.442695, %v458_v28 }
 0x1a4   : > { %v419_v22 = vpop.xlane.xlu1 %418  ;;  %v472_v24 = vmul.f32 1.442695, %v456_v20 }
 0x1a5   : > { %v459_v25 = vsub.f32 %v4767_v2, %v419_v22  ;;  %v413_v27 = vpop.xlane.xlu0 %412 }
 0x1a6   : > { %v457_v30 = vsub.f32 %v4772_v8, %v413_v27  ;;  %4460 = vpow2.f32 %v472_v24 }
 0x1a7   : > { %v478_v31 = vmul.f32 1.442695, %v459_v25 }
 0x1a8   : > { %v474_v32 = vmul.f32 1.442695, %v457_v30 }
 0x1a9   : > { %v422_v33 = vpop.xlane.xlu0 %421 }
 0x1aa   : > { %4462 = vpow2.f32 %v474_v32  ;;  %v460_v35 = vsub.f32 %v4784_v23, %v422_v33 }
 0x1ab   : > { %v425_v36 = vpop.xlane.xlu1 %424  ;;  %4464 = vpow2.f32 %v478_v31 }
 0x1ac   : > { %v461_v63 = vsub.f32 %v4790_v29, %v425_v36  ;;  %4466 = vpow2.f32 %v476_v34  ;;  %v480_v2 = vmul.f32 1.442695, %v460_v35 }
 0x1ad   : > { %v428_v37 = vpop.xlane.xlu0 %427 }
 0x1ae   : > { %v482_v38 = vmul.f32 1.442695, %v461_v63  ;;  %v462_v61 = vsub.f32 %v4782_v21, %v428_v37  ;;  %v4631_v63 = vmov 1.0  }
 0x1af   : > { %v431_v39 = vpop.xlane.xlu1 %430 }
 0x1b0   : > { %4468 = vpow2.f32 %v482_v38  ;;  %v463_v8 = vsub.f32 %v4787_v26, %v431_v39  ;;  %v484_v42 = vmul.f32 1.442695, %v462_v61  ;;  %v4853_v45 = vpop.eup %4460 }
 0x1b1   : > { %v434_v40 = vpop.xlane.xlu0 %433  ;;  %4470 = vpow2.f32 %v480_v2 }
 0x1b2   : > { %v486_v44 = vmul.f32 1.442695, %v463_v8  ;;  %v464_v23 = vsub.f32 %v4804_v43, %v434_v40 }
 0x1b3   : > { %v437_v47 = vpop.xlane.xlu1 %436 }
 0x1b4   : > { %v4855_v29 = vpop.eup %4462  ;;  %4472 = vpow2.f32 %v486_v44  ;;  %v465_v48 = vsub.f32 %v4810_v49, %v437_v47  ;;  %v488_v51 = vmul.f32 1.442695, %v464_v23 }
 0x1b5   : > { %v4866_v26 = vpack.c.bf16 %v4855_v29, %v4853_v45  ;;  %v440_v50 = vpop.xlane.xlu0 %439  ;;  %v4868_v43 = vpop.eup %4464  ;;  %4474 = vpow2.f32 %v484_v42 }
 0x1b6   : > { %v490_v52 = vmul.f32 1.442695, %v465_v48  ;;  %v466_v53 = vsub.f32 %v4802_v41, %v440_v50  ;;  %v4875_v54 = vpop.eup %4466 }
 0x1b7   : > { %3842 = vmatpush3.bf16.xpose.msk.msra.mxu1 %vm4860_vm2, %v4866_v26  ;;  %3873 = vmatpush3.bf16.msra.mxu0 %v4866_v26  ;;  %v443_v49 = vpop.xlane.xlu1 %442  ;;  %v4882_v56 = vpack.c.bf16 %v4868_v43, %v4875_v54 }
 0x1b8   : > { %4476 = vpow2.f32 %v490_v52  ;;  %v467_v55 = vsub.f32 %v4807_v46, %v443_v49  ;;  %3874 = vmatprep.subr.bf16.mxu0 %v4628_v15  ;;  %3843 = vmatprep.subr.bf16.mxu1 %v4628_v15  ;;  %v492_v58 = vmul.f32 1.442695, %v466_v53 }
 0x1b9   : > { %v446_v41 = vpop.xlane.xlu0 %445  ;;  %4478 = vpow2.f32 %v488_v51 }
 0x1ba   : > { %v4884_v57 = vpop.eup %4468  ;;  %v494_v59 = vmul.f32 1.442695, %v467_v55  ;;  %v468_v60 = vsub.f32 %v4824_v1, %v446_v41 }
 0x1bb   : > { %3876 = vmatpush3.bf16.msra.mxu0 %v4882_v56  ;;  %v449_v0 = vpop.xlane.xlu1 %448  ;;  %v4888_v46 = vpop.eup %4470 }
 0x1bc   : > { %4480 = vpow2.f32 %v494_v59  ;;  %v469_v4 = vsub.f32 %v4828_v9, %v449_v0  ;;  %3877 = vmatprep.subr.bf16.mxu0 %v4628_v15  ;;  %v4894_v7 = vpack.c.bf16 %v4884_v57, %v4888_v46  ;;  %v496_v12 = vmul.f32 1.442695, %v468_v60 }
 0x1bd   : > { %v452_v10 = vpop.xlane.xlu0 %451  ;;  %4482 = vpow2.f32 %v492_v58 }
 0x1be   : > { %v4896_v11 = vpop.eup %4472  ;;  %v498_v1 = vmul.f32 1.442695, %v469_v4  ;;  %v470_v14 = vsub.f32 %v4822_v62, %v452_v10 }
 0x1bf   : > { %3846 = vmatpush3.bf16.xpose.msk.msra.mxu1 %vm4860_vm2, %v4882_v56  ;;  %3879 = vmatpush3.bf16.msra.mxu0 %v4894_v7  ;;  %v455_v9 = vpop.xlane.xlu1 %454  ;;  %v4903_v18 = vpop.eup %4474 }
 0x1c0   : > { %4484 = vpow2.f32 %v498_v1  ;;  %v471_v19 = vsub.f32 %v4826_v6, %v455_v9  ;;  %3880 = vmatprep.subr.bf16.mxu0 %v4628_v15  ;;  %3847 = vmatprep.subr.bf16.mxu1 %v4628_v15  ;;  %v4910_v20 = vpack.c.bf16 %v4896_v11, %v4903_v18  ;;  %v500_v22 = vmul.f32 1.442695, %v470_v14 }
 0x1c1   : > { %4486 = vpow2.f32 %v496_v12 }
 0x1c2   : > { %v4912_v62 = vpop.eup %4476  ;;  %v502_v24 = vmul.f32 1.442695, %v471_v19 }
 0x1c3   : > { %3882 = vmatpush3.bf16.msra.mxu0 %v4910_v20  ;;  %v4915_v25 = vpop.eup %4478 }
 0x1c4   : > { %4488 = vpow2.f32 %v502_v24  ;;  %3883 = vmatprep.subr.bf16.mxu0 %v4628_v15  ;;  %v4920_v6 = vpack.c.bf16 %v4912_v62, %v4915_v25 }
 0x1c5   : > { %4490 = vpow2.f32 %v500_v22 }
 0x1c6   : > { %v4922_v27 = vpop.eup %4480 }
 0x1c7   : > { %3850 = vmatpush3.bf16.xpose.msk.msra.mxu1 %vm4860_vm2, %v4894_v7  ;;  %3885 = vmatpush3.bf16.msra.mxu0 %v4920_v6  ;;  %v4928_v28 = vpop.eup %4482 }
 0x1c8   : > { %3886 = vmatprep.subr.bf16.mxu0 %v4628_v15  ;;  %3851 = vmatprep.subr.bf16.mxu1 %v4628_v15  ;;  %v4934_v30 = vpack.c.bf16 %v4922_v27, %v4928_v28 }
 0x1ca   : > { %v4936_v31 = vpop.eup %4484 }
 0x1cb   : > { %3888 = vmatpush3.bf16.msra.mxu0 %v4934_v30  ;;  %v4939_v32 = vpop.eup %4486 }
 0x1cc   : > { %3889 = vmatprep.subr.bf16.mxu0 %v4628_v15  ;;  %v4944_v33 = vpack.c.bf16 %v4936_v31, %v4939_v32 }
 0x1ce   : > { %v4946_v34 = vpop.eup %4488 }
 0x1cf   : > { %3854 = vmatpush3.bf16.xpose.msk.msra.mxu1 %vm4860_vm2, %v4910_v20  ;;  %3891 = vmatpush3.bf16.msra.mxu0 %v4944_v33  ;;  %v4952_v35 = vpop.eup %4490 }
 0x1d0   : > { %3892 = vmatprep.subr.bf16.mxu0 %v4628_v15  ;;  %3855 = vmatprep.subr.bf16.mxu1 %v4628_v15  ;;  %v4958_v36 = vpack.c.bf16 %v4946_v34, %v4952_v35 }
 0x1d3   : > { %3894 = vmatpush3.bf16.msra.mxu0 %v4958_v36 }
 0x1d4   : > { %3895 = vmatprep.subr.bf16.mxu0 %v4628_v15 }
 0x1d7   : > { %3858 = vmatpush3.bf16.xpose.msk.msra.mxu1 %vm4860_vm2, %v4920_v6 }
 0x1d8   : > { %3859 = vmatprep.subr.bf16.mxu1 %v4628_v15 }
 0x1df   : > { %3862 = vmatpush3.bf16.xpose.msk.msra.mxu1 %vm4860_vm2, %v4934_v30 }
 0x1e0   : > { %3863 = vmatprep.subr.bf16.mxu1 %v4628_v15 }
 0x1e7   : > { %3866 = vmatpush3.bf16.xpose.msk.msra.mxu1 %vm4860_vm2, %v4944_v33 }
 0x1e8   : > { %3867 = vmatprep.subr.bf16.mxu1 %v4628_v15 }
 0x1ef   : > { %3870 = vmatpush3.bf16.xpose.msk.msra.mxu1 %vm4860_vm2, %v4958_v36 }
 0x1f0   : > { %3927 = vmatprep.subr.bf16.mxu1 %v4628_v15 }
 0x1f6   : > { %3132 = vmatmul.mubr.msk.f32.vlgmr.msra.gmra.mrb[0].mxu1 %vm407_vm0, %v4631_v63 }
 0x1f7   : > { %3929 = vmatpush3.bf16.msra.mxu1 %v4866_v26  ;;  %3236 = vmatprep.mubr.msk.f32.mxu1 %vm4629_vm1, %v4630_v17 }
 0x1f8   : > { %3930 = vmatprep.subr.bf16.mxu1 %v4628_v15 }
 0x1fb   : > { %3932 = vmatpush3.bf16.msra.mxu1 %v4882_v56 }
 0x1fc   : > { %3933 = vmatprep.subr.bf16.mxu1 %v4628_v15 }
 0x1ff   : > { %3935 = vmatpush3.bf16.msra.mxu1 %v4894_v7 }
 0x200   : > { %3936 = vmatprep.subr.bf16.mxu1 %v4628_v15 }
 0x203   : > { %3938 = vmatpush3.bf16.msra.mxu1 %v4910_v20 }
 0x204   : > { %3939 = vmatprep.subr.bf16.mxu1 %v4628_v15 }
 0x207   : > { %3941 = vmatpush3.bf16.msra.mxu1 %v4920_v6 }
 0x208   : > { %3942 = vmatprep.subr.bf16.mxu1 %v4628_v15 }
 0x20b   : > { %3944 = vmatpush3.bf16.msra.mxu1 %v4934_v30 }
 0x20c   : > { %3945 = vmatprep.subr.bf16.mxu1 %v4628_v15 }
 0x20f   : > { %3947 = vmatpush3.bf16.msra.mxu1 %v4944_v33 }
 0x210   : > { %3948 = vmatprep.subr.bf16.mxu1 %v4628_v15 }
 0x213   : > { %3950 = vmatpush3.bf16.msra.mxu1 %v4958_v36 }
 0x214   : > { %3951 = vmatprep.subr.bf16.mxu1 %v4628_v15 }
 0x2c9   : > { %v621_v37 = vpop.f32.mrb[0].mxu1 }
 0x2ca   : > { %v625_v2 = vmax.f32 %v621_v37, 1e-35  ;;  %v3133_v38 = vpop.f32.mrb[1].mxu1 }
 0x2cc   : > { %4492 = vrcp.f32 %v625_v2 }
 0x2d6   : > { %v4493_v61 = vpop.eup %4492 }
 0x2d7   : > { %v627_v39 = vmul.f32 0.5, %v4493_v61 }
 0x2d9   : > { %3167 = vmatmul.mubr.f32.vlgmr.msra.gmra.mrb[16].mxu0 %v627_v39 }
 0x2da   : > { %3898 = vmatpush3.bf16.xpose.msk.msra.mxu0 %vm4860_vm2, %v4866_v26  ;;  %3201 = vmatprep.mubr.msk.f32.mxu0 %vm4629_vm1, %v4630_v17 }
 0x2db   : > { %3899 = vmatprep.subr.bf16.mxu0 %v4628_v15 }
 0x2e2   : > { %3902 = vmatpush3.bf16.xpose.msk.msra.mxu0 %vm4860_vm2, %v4882_v56 }
 0x2e3   : > { %3903 = vmatprep.subr.bf16.mxu0 %v4628_v15 }
 0x2ea   : > { %3906 = vmatpush3.bf16.xpose.msk.msra.mxu0 %vm4860_vm2, %v4894_v7 }
 0x2eb   : > { %3907 = vmatprep.subr.bf16.mxu0 %v4628_v15 }
 0x2f2   : > { %3910 = vmatpush3.bf16.xpose.msk.msra.mxu0 %vm4860_vm2, %v4910_v20 }
 0x2f3   : > { %3911 = vmatprep.subr.bf16.mxu0 %v4628_v15 }
 0x2fa   : > { %3914 = vmatpush3.bf16.xpose.msk.msra.mxu0 %vm4860_vm2, %v4920_v6 }
 0x2fb   : > { %3915 = vmatprep.subr.bf16.mxu0 %v4628_v15 }
 0x302   : > { %3918 = vmatpush3.bf16.xpose.msk.msra.mxu0 %vm4860_vm2, %v4934_v30 }
 0x303   : > { %3919 = vmatprep.subr.bf16.mxu0 %v4628_v15 }
 0x30a   : > { %3922 = vmatpush3.bf16.xpose.msk.msra.mxu0 %vm4860_vm2, %v4944_v33 }
 0x30b   : > { %3923 = vmatprep.subr.bf16.mxu0 %v4628_v15 }
 0x312   : > { %3926 = vmatpush3.bf16.xpose.msk.msra.mxu0 %vm4860_vm2, %v4958_v36 }
 0x313   : > { %3983 = vmatprep.subr.bf16.mxu0 %v4628_v15 }
 0x3ac   : > { %v694_v8 = vpop.f32.mrb[16].mxu0 }
 0x3ad   : > { %v698_v40 = vmax.f32 %v694_v8, 1e-35  ;;  %v3168_v42 = vpop.f32.mrb[17].mxu0 }
 0x3af   : > { %4494 = vrcp.f32 %v698_v40 }
 0x3b9   : > { %v4495_v44 = vpop.eup %4494 }
 0x3ba   : > { %3202 = vmatmul.mubr.msk.f32.vlgmr.msra.gmra.mrb[18].mxu0 %vm407_vm0, %v4495_v44 }
 0x3bb   : > { %3985 = vmatpush3.bf16.msra.mxu0 %v4866_v26  ;;  %3306 = vmatprep.mubr.msk.f32.mxu0 %vm4629_vm1, %v4630_v17 }
 0x3bc   : > { %3986 = vmatprep.subr.bf16.mxu0 %v4628_v15 }
 0x3bf   : > { %3988 = vmatpush3.bf16.msra.mxu0 %v4882_v56 }
 0x3c0   : > { %3989 = vmatprep.subr.bf16.mxu0 %v4628_v15 }
 0x3c3   : > { %3991 = vmatpush3.bf16.msra.mxu0 %v4894_v7 }
 0x3c4   : > { %3992 = vmatprep.subr.bf16.mxu0 %v4628_v15 }
 0x3c7   : > { %3994 = vmatpush3.bf16.msra.mxu0 %v4910_v20 }
 0x3c8   : > { %3995 = vmatprep.subr.bf16.mxu0 %v4628_v15 }
 0x3cb   : > { %3997 = vmatpush3.bf16.msra.mxu0 %v4920_v6 }
 0x3cc   : > { %3998 = vmatprep.subr.bf16.mxu0 %v4628_v15 }
 0x3cf   : > { %4000 = vmatpush3.bf16.msra.mxu0 %v4934_v30 }
 0x3d0   : > { %4001 = vmatprep.subr.bf16.mxu0 %v4628_v15 }
 0x3d3   : > { %4003 = vmatpush3.bf16.msra.mxu0 %v4944_v33 }
 0x3d4   : > { %4004 = vmatprep.subr.bf16.mxu0 %v4628_v15 }
 0x3d7   : > { %4006 = vmatpush3.bf16.msra.mxu0 %v4958_v36 }
 0x3d8   : > { %4007 = vmatprep.subr.bf16.mxu0 %v4628_v15 }
 0x48d   : > { %v769_v23 = vpop.f32.mrb[18].mxu0 }
 0x48e   : > { %v773_v47 = vmax.f32 %v769_v23, 1e-35  ;;  %v3203_v48 = vpop.f32.mrb[19].mxu0 }
 0x490   : > { %4496 = vrcp.f32 %v773_v47 }
 0x49a   : > { %v4497_v50 = vpop.eup %4496 }
 0x49b   : > { %v775_v51 = vmul.f32 0.5, %v4497_v50 }
 0x49d   : > { %3237 = vmatmul.mubr.f32.vlgmr.msra.gmra.mrb[2].mxu1 %v775_v51 }
 0x49e   : > { %3954 = vmatpush3.bf16.xpose.msk.msra.mxu1 %vm4860_vm2, %v4866_v26  ;;  %3271 = vmatprep.mubr.msk.f32.mxu1 %vm4629_vm1, %v4630_v17 }
 0x49f   : > { %3955 = vmatprep.subr.bf16.mxu1 %v4628_v15 }
 0x4a6   : > { %3958 = vmatpush3.bf16.xpose.msk.msra.mxu1 %vm4860_vm2, %v4882_v56 }
 0x4a7   : > { %3959 = vmatprep.subr.bf16.mxu1 %v4628_v15 }
 0x4ae   : > { %3962 = vmatpush3.bf16.xpose.msk.msra.mxu1 %vm4860_vm2, %v4894_v7 }
 0x4af   : > { %3963 = vmatprep.subr.bf16.mxu1 %v4628_v15 }
 0x4b6   : > { %3966 = vmatpush3.bf16.xpose.msk.msra.mxu1 %vm4860_vm2, %v4910_v20 }
 0x4b7   : > { %3967 = vmatprep.subr.bf16.mxu1 %v4628_v15 }
 0x4be   : > { %3970 = vmatpush3.bf16.xpose.msk.msra.mxu1 %vm4860_vm2, %v4920_v6 }
 0x4bf   : > { %3971 = vmatprep.subr.bf16.mxu1 %v4628_v15 }
 0x4c6   : > { %3974 = vmatpush3.bf16.xpose.msk.msra.mxu1 %vm4860_vm2, %v4934_v30 }
 0x4c7   : > { %3975 = vmatprep.subr.bf16.mxu1 %v4628_v15 }
 0x4ce   : > { %3978 = vmatpush3.bf16.xpose.msk.msra.mxu1 %vm4860_vm2, %v4944_v33 }
 0x4cf   : > { %3979 = vmatprep.subr.bf16.mxu1 %v4628_v15 }
 0x4d6   : > { %3982 = vmatpush3.bf16.xpose.msk.msra.mxu1 %vm4860_vm2, %v4958_v36 }
 0x4d7   : > { %4039 = vmatprep.subr.bf16.mxu1 %v4628_v15 }
 0x570   : > { %v842_v52 = vpop.f32.mrb[2].mxu1 }
 0x571   : > { %v846_v53 = vmax.f32 %v842_v52, 1e-35  ;;  %v3238_v49 = vpop.f32.mrb[3].mxu1 }
 0x573   : > { %4498 = vrcp.f32 %v846_v53 }
 0x57d   : > { %v4499_v55 = vpop.eup %4498 }
 0x57e   : > { %3272 = vmatmul.mubr.msk.f32.vlgmr.msra.gmra.mrb[4].mxu1 %vm407_vm0, %v4499_v55 }
 0x57f   : > { %4041 = vmatpush3.bf16.msra.mxu1 %v4866_v26  ;;  %3376 = vmatprep.mubr.msk.f32.mxu1 %vm4629_vm1, %v4630_v17 }
 0x580   : > { %4042 = vmatprep.subr.bf16.mxu1 %v4628_v15 }
 0x583   : > { %4044 = vmatpush3.bf16.msra.mxu1 %v4882_v56 }
 0x584   : > { %4045 = vmatprep.subr.bf16.mxu1 %v4628_v15 }
 0x587   : > { %4047 = vmatpush3.bf16.msra.mxu1 %v4894_v7 }
 0x588   : > { %4048 = vmatprep.subr.bf16.mxu1 %v4628_v15 }
 0x58b   : > { %4050 = vmatpush3.bf16.msra.mxu1 %v4910_v20 }
 0x58c   : > { %4051 = vmatprep.subr.bf16.mxu1 %v4628_v15 }
 0x58f   : > { %4053 = vmatpush3.bf16.msra.mxu1 %v4920_v6 }
 0x590   : > { %4054 = vmatprep.subr.bf16.mxu1 %v4628_v15 }
 0x593   : > { %4056 = vmatpush3.bf16.msra.mxu1 %v4934_v30 }
 0x594   : > { %4057 = vmatprep.subr.bf16.mxu1 %v4628_v15 }
 0x597   : > { %4059 = vmatpush3.bf16.msra.mxu1 %v4944_v33 }
 0x598   : > { %4060 = vmatprep.subr.bf16.mxu1 %v4628_v15 }
 0x59b   : > { %4062 = vmatpush3.bf16.msra.mxu1 %v4958_v36 }
 0x59c   : > { %4063 = vmatprep.subr.bf16.mxu1 %v4628_v15 }
 0x651   : > { %v917_v41 = vpop.f32.mrb[4].mxu1 }
 0x652   : > { %v921_v58 = vmax.f32 %v917_v41, 1e-35  ;;  %v3273_v59 = vpop.f32.mrb[5].mxu1 }
 0x654   : > { %4500 = vrcp.f32 %v921_v58 }
 0x65e   : > { %v4501_v60 = vpop.eup %4500 }
 0x65f   : > { %v923_v0 = vmul.f32 0.5, %v4501_v60 }
 0x661   : > { %3307 = vmatmul.mubr.f32.vlgmr.msra.gmra.mrb[20].mxu0 %v923_v0 }
 0x662   : > { %4010 = vmatpush3.bf16.xpose.msk.msra.mxu0 %vm4860_vm2, %v4866_v26  ;;  %3341 = vmatprep.mubr.msk.f32.mxu0 %vm4629_vm1, %v4630_v17 }
 0x663   : > { %4011 = vmatprep.subr.bf16.mxu0 %v4628_v15 }
 0x66a   : > { %4014 = vmatpush3.bf16.xpose.msk.msra.mxu0 %vm4860_vm2, %v4882_v56 }
 0x66b   : > { %4015 = vmatprep.subr.bf16.mxu0 %v4628_v15 }
 0x672   : > { %4018 = vmatpush3.bf16.xpose.msk.msra.mxu0 %vm4860_vm2, %v4894_v7 }
 0x673   : > { %4019 = vmatprep.subr.bf16.mxu0 %v4628_v15 }
 0x67a   : > { %4022 = vmatpush3.bf16.xpose.msk.msra.mxu0 %vm4860_vm2, %v4910_v20 }
 0x67b   : > { %4023 = vmatprep.subr.bf16.mxu0 %v4628_v15 }
 0x682   : > { %4026 = vmatpush3.bf16.xpose.msk.msra.mxu0 %vm4860_vm2, %v4920_v6 }
 0x683   : > { %4027 = vmatprep.subr.bf16.mxu0 %v4628_v15 }
 0x68a   : > { %4030 = vmatpush3.bf16.xpose.msk.msra.mxu0 %vm4860_vm2, %v4934_v30 }
 0x68b   : > { %4031 = vmatprep.subr.bf16.mxu0 %v4628_v15 }
 0x692   : > { %4034 = vmatpush3.bf16.xpose.msk.msra.mxu0 %vm4860_vm2, %v4944_v33 }
 0x693   : > { %4035 = vmatprep.subr.bf16.mxu0 %v4628_v15 }
 0x69a   : > { %4038 = vmatpush3.bf16.xpose.msk.msra.mxu0 %vm4860_vm2, %v4958_v36 }
 0x69b   : > { %4095 = vmatprep.subr.bf16.mxu0 %v4628_v15 }
 0x734   : > { %v990_v4 = vpop.f32.mrb[20].mxu0 }
 0x735   : > { %v994_v10 = vmax.f32 %v990_v4, 1e-35  ;;  %v3308_v12 = vpop.f32.mrb[21].mxu0 }
 0x737   : > { %4502 = vrcp.f32 %v994_v10 }
 0x741   : > { %v4503_v1 = vpop.eup %4502 }
 0x742   : > { %3342 = vmatmul.mubr.msk.f32.vlgmr.msra.gmra.mrb[22].mxu0 %vm407_vm0, %v4503_v1 }
 0x743   : > { %4097 = vmatpush3.bf16.msra.mxu0 %v4866_v26  ;;  %3446 = vmatprep.mubr.msk.f32.mxu0 %vm4629_vm1, %v4630_v17 }
 0x744   : > { %4098 = vmatprep.subr.bf16.mxu0 %v4628_v15 }
 0x747   : > { %4100 = vmatpush3.bf16.msra.mxu0 %v4882_v56 }
 0x748   : > { %4101 = vmatprep.subr.bf16.mxu0 %v4628_v15 }
 0x74b   : > { %4103 = vmatpush3.bf16.msra.mxu0 %v4894_v7 }
 0x74c   : > { %4104 = vmatprep.subr.bf16.mxu0 %v4628_v15 }
 0x74f   : > { %4106 = vmatpush3.bf16.msra.mxu0 %v4910_v20 }
 0x750   : > { %4107 = vmatprep.subr.bf16.mxu0 %v4628_v15 }
 0x753   : > { %4109 = vmatpush3.bf16.msra.mxu0 %v4920_v6 }
 0x754   : > { %4110 = vmatprep.subr.bf16.mxu0 %v4628_v15 }
 0x757   : > { %4112 = vmatpush3.bf16.msra.mxu0 %v4934_v30 }
 0x758   : > { %4113 = vmatprep.subr.bf16.mxu0 %v4628_v15 }
 0x75b   : > { %4115 = vmatpush3.bf16.msra.mxu0 %v4944_v33 }
 0x75c   : > { %4116 = vmatprep.subr.bf16.mxu0 %v4628_v15 }
 0x75f   : > { %4118 = vmatpush3.bf16.msra.mxu0 %v4958_v36 }
 0x760   : > { %4119 = vmatprep.subr.bf16.mxu0 %v4628_v15 }
 0x815   : > { %v1065_v14 = vpop.f32.mrb[22].mxu0 }
 0x816   : > { %v1069_v9 = vmax.f32 %v1065_v14, 1e-35  ;;  %v3343_v19 = vpop.f32.mrb[23].mxu0 }
 0x818   : > { %4504 = vrcp.f32 %v1069_v9 }
 0x822   : > { %v4505_v22 = vpop.eup %4504 }
 0x823   : > { %v1071_v24 = vmul.f32 0.5, %v4505_v22 }
 0x825   : > { %3377 = vmatmul.mubr.f32.vlgmr.msra.gmra.mrb[6].mxu1 %v1071_v24 }
 0x826   : > { %4066 = vmatpush3.bf16.xpose.msk.msra.mxu1 %vm4860_vm2, %v4866_v26  ;;  %3411 = vmatprep.mubr.msk.f32.mxu1 %vm4629_vm1, %v4630_v17 }
 0x827   : > { %4067 = vmatprep.subr.bf16.mxu1 %v4628_v15 }
 0x82e   : > { %4070 = vmatpush3.bf16.xpose.msk.msra.mxu1 %vm4860_vm2, %v4882_v56 }
 0x82f   : > { %4071 = vmatprep.subr.bf16.mxu1 %v4628_v15 }
 0x836   : > { %4074 = vmatpush3.bf16.xpose.msk.msra.mxu1 %vm4860_vm2, %v4894_v7 }
 0x837   : > { %4075 = vmatprep.subr.bf16.mxu1 %v4628_v15 }
 0x83e   : > { %4078 = vmatpush3.bf16.xpose.msk.msra.mxu1 %vm4860_vm2, %v4910_v20 }
 0x83f   : > { %4079 = vmatprep.subr.bf16.mxu1 %v4628_v15 }
 0x846   : > { %4082 = vmatpush3.bf16.xpose.msk.msra.mxu1 %vm4860_vm2, %v4920_v6 }
 0x847   : > { %4083 = vmatprep.subr.bf16.mxu1 %v4628_v15 }
 0x84e   : > { %4086 = vmatpush3.bf16.xpose.msk.msra.mxu1 %vm4860_vm2, %v4934_v30 }
 0x84f   : > { %4087 = vmatprep.subr.bf16.mxu1 %v4628_v15 }
 0x856   : > { %4090 = vmatpush3.bf16.xpose.msk.msra.mxu1 %vm4860_vm2, %v4944_v33 }
 0x857   : > { %4091 = vmatprep.subr.bf16.mxu1 %v4628_v15 }
 0x85e   : > { %4094 = vmatpush3.bf16.xpose.msk.msra.mxu1 %vm4860_vm2, %v4958_v36 }
 0x85f   : > { %4151 = vmatprep.subr.bf16.mxu1 %v4628_v15 }
 0x8f8   : > { %v1138_v63 = vpop.f32.mrb[6].mxu1 }
 0x8f9   : > { %v1142_v37 = vmax.f32 %v1138_v63, 1e-35  ;;  %v3378_v2 = vpop.f32.mrb[7].mxu1 }
 0x8fb   : > { %4506 = vrcp.f32 %v1142_v37 }
 0x905   : > { %v4507_v38 = vpop.eup %4506 }
 0x906   : > { %3412 = vmatmul.mubr.msk.f32.vlgmr.msra.gmra.mrb[8].mxu1 %vm407_vm0, %v4507_v38 }
 0x907   : > { %4153 = vmatpush3.bf16.msra.mxu1 %v4866_v26  ;;  %3516 = vmatprep.mubr.msk.f32.mxu1 %vm4629_vm1, %v4630_v17 }
 0x908   : > { %4154 = vmatprep.subr.bf16.mxu1 %v4628_v15 }
 0x90b   : > { %4156 = vmatpush3.bf16.msra.mxu1 %v4882_v56 }
 0x90c   : > { %4157 = vmatprep.subr.bf16.mxu1 %v4628_v15 }
 0x90f   : > { %4159 = vmatpush3.bf16.msra.mxu1 %v4894_v7 }
 0x910   : > { %4160 = vmatprep.subr.bf16.mxu1 %v4628_v15 }
 0x913   : > { %4162 = vmatpush3.bf16.msra.mxu1 %v4910_v20 }
 0x914   : > { %4163 = vmatprep.subr.bf16.mxu1 %v4628_v15 }
 0x917   : > { %4165 = vmatpush3.bf16.msra.mxu1 %v4920_v6 }
 0x918   : > { %4166 = vmatprep.subr.bf16.mxu1 %v4628_v15 }
 0x91b   : > { %4168 = vmatpush3.bf16.msra.mxu1 %v4934_v30 }
 0x91c   : > { %4169 = vmatprep.subr.bf16.mxu1 %v4628_v15 }
 0x91f   : > { %4171 = vmatpush3.bf16.msra.mxu1 %v4944_v33 }
 0x920   : > { %4172 = vmatprep.subr.bf16.mxu1 %v4628_v15 }
 0x923   : > { %4174 = vmatpush3.bf16.msra.mxu1 %v4958_v36 }
 0x924   : > { %4175 = vmatprep.subr.bf16.mxu1 %v4628_v15 }
 0x9d9   : > { %v1213_v61 = vpop.f32.mrb[8].mxu1 }
 0x9da   : > { %v1217_v39 = vmax.f32 %v1213_v61, 1e-35  ;;  %v3413_v8 = vpop.f32.mrb[9].mxu1 }
 0x9dc   : > { %4508 = vrcp.f32 %v1217_v39 }
 0x9e6   : > { %v4509_v40 = vpop.eup %4508 }
 0x9e7   : > { %v1219_v42 = vmul.f32 0.5, %v4509_v40 }
 0x9e9   : > { %3447 = vmatmul.mubr.f32.vlgmr.msra.gmra.mrb[24].mxu0 %v1219_v42 }
 0x9ea   : > { %4122 = vmatpush3.bf16.xpose.msk.msra.mxu0 %vm4860_vm2, %v4866_v26  ;;  %3481 = vmatprep.mubr.msk.f32.mxu0 %vm4629_vm1, %v4630_v17 }
 0x9eb   : > { %4123 = vmatprep.subr.bf16.mxu0 %v4628_v15 }
 0x9f2   : > { %4126 = vmatpush3.bf16.xpose.msk.msra.mxu0 %vm4860_vm2, %v4882_v56 }
 0x9f3   : > { %4127 = vmatprep.subr.bf16.mxu0 %v4628_v15 }
 0x9fa   : > { %4130 = vmatpush3.bf16.xpose.msk.msra.mxu0 %vm4860_vm2, %v4894_v7 }
 0x9fb   : > { %4131 = vmatprep.subr.bf16.mxu0 %v4628_v15 }
 0xa02   : > { %4134 = vmatpush3.bf16.xpose.msk.msra.mxu0 %vm4860_vm2, %v4910_v20 }
 0xa03   : > { %4135 = vmatprep.subr.bf16.mxu0 %v4628_v15 }
 0xa0a   : > { %4138 = vmatpush3.bf16.xpose.msk.msra.mxu0 %vm4860_vm2, %v4920_v6 }
 0xa0b   : > { %4139 = vmatprep.subr.bf16.mxu0 %v4628_v15 }
 0xa12   : > { %4142 = vmatpush3.bf16.xpose.msk.msra.mxu0 %vm4860_vm2, %v4934_v30 }
 0xa13   : > { %4143 = vmatprep.subr.bf16.mxu0 %v4628_v15 }
 0xa1a   : > { %4146 = vmatpush3.bf16.xpose.msk.msra.mxu0 %vm4860_vm2, %v4944_v33 }
 0xa1b   : > { %4147 = vmatprep.subr.bf16.mxu0 %v4628_v15 }
 0xa22   : > { %4150 = vmatpush3.bf16.xpose.msk.msra.mxu0 %vm4860_vm2, %v4958_v36 }
 0xa23   : > { %4207 = vmatprep.subr.bf16.mxu0 %v4628_v15 }
 0xabc   : > { %v1286_v44 = vpop.f32.mrb[24].mxu0 }
 0xabd   : > { %v1290_v23 = vmax.f32 %v1286_v44, 1e-35  ;;  %v3448_v47 = vpop.f32.mrb[25].mxu0 }
 0xabf   : > { %4510 = vrcp.f32 %v1290_v23 }
 0xac9   : > { %v4511_v48 = vpop.eup %4510 }
 0xaca   : > { %3482 = vmatmul.mubr.msk.f32.vlgmr.msra.gmra.mrb[26].mxu0 %vm407_vm0, %v4511_v48 }
 0xacb   : > { %4209 = vmatpush3.bf16.msra.mxu0 %v4866_v26  ;;  %3586 = vmatprep.mubr.msk.f32.mxu0 %vm4629_vm1, %v4630_v17 }
 0xacc   : > { %4210 = vmatprep.subr.bf16.mxu0 %v4628_v15 }
 0xacf   : > { %4212 = vmatpush3.bf16.msra.mxu0 %v4882_v56 }
 0xad0   : > { %4213 = vmatprep.subr.bf16.mxu0 %v4628_v15 }
 0xad3   : > { %4215 = vmatpush3.bf16.msra.mxu0 %v4894_v7 }
 0xad4   : > { %4216 = vmatprep.subr.bf16.mxu0 %v4628_v15 }
 0xad7   : > { %4218 = vmatpush3.bf16.msra.mxu0 %v4910_v20 }
 0xad8   : > { %4219 = vmatprep.subr.bf16.mxu0 %v4628_v15 }
 0xadb   : > { %4221 = vmatpush3.bf16.msra.mxu0 %v4920_v6 }
 0xadc   : > { %4222 = vmatprep.subr.bf16.mxu0 %v4628_v15 }
 0xadf   : > { %4224 = vmatpush3.bf16.msra.mxu0 %v4934_v30 }
 0xae0   : > { %4225 = vmatprep.subr.bf16.mxu0 %v4628_v15 }
 0xae3   : > { %4227 = vmatpush3.bf16.msra.mxu0 %v4944_v33 }
 0xae4   : > { %4228 = vmatprep.subr.bf16.mxu0 %v4628_v15 }
 0xae7   : > { %4230 = vmatpush3.bf16.msra.mxu0 %v4958_v36 }
 0xae8   : > { %4231 = vmatprep.subr.bf16.mxu0 %v4628_v15 }
 0xb9d   : > { %v1361_v50 = vpop.f32.mrb[26].mxu0 }
 0xb9e   : > { %v1365_v51 = vmax.f32 %v1361_v50, 1e-35  ;;  %v3483_v52 = vpop.f32.mrb[27].mxu0 }
 0xba0   : > { %4512 = vrcp.f32 %v1365_v51 }
 0xbaa   : > { %v4513_v53 = vpop.eup %4512 }
 0xbab   : > { %v1367_v49 = vmul.f32 0.5, %v4513_v53 }
 0xbad   : > { %3517 = vmatmul.mubr.f32.vlgmr.msra.gmra.mrb[10].mxu1 %v1367_v49 }
 0xbae   : > { %4178 = vmatpush3.bf16.xpose.msk.msra.mxu1 %vm4860_vm2, %v4866_v26  ;;  %3551 = vmatprep.mubr.msk.f32.mxu1 %vm4629_vm1, %v4630_v17 }
 0xbaf   : > { %4179 = vmatprep.subr.bf16.mxu1 %v4628_v15 }
 0xbb6   : > { %4182 = vmatpush3.bf16.xpose.msk.msra.mxu1 %vm4860_vm2, %v4882_v56 }
 0xbb7   : > { %4183 = vmatprep.subr.bf16.mxu1 %v4628_v15 }
 0xbbe   : > { %4186 = vmatpush3.bf16.xpose.msk.msra.mxu1 %vm4860_vm2, %v4894_v7 }
 0xbbf   : > { %4187 = vmatprep.subr.bf16.mxu1 %v4628_v15 }
 0xbc6   : > { %4190 = vmatpush3.bf16.xpose.msk.msra.mxu1 %vm4860_vm2, %v4910_v20 }
 0xbc7   : > { %4191 = vmatprep.subr.bf16.mxu1 %v4628_v15 }
 0xbce   : > { %4194 = vmatpush3.bf16.xpose.msk.msra.mxu1 %vm4860_vm2, %v4920_v6 }
 0xbcf   : > { %4195 = vmatprep.subr.bf16.mxu1 %v4628_v15 }
 0xbd6   : > { %4198 = vmatpush3.bf16.xpose.msk.msra.mxu1 %vm4860_vm2, %v4934_v30 }
 0xbd7   : > { %4199 = vmatprep.subr.bf16.mxu1 %v4628_v15 }
 0xbde   : > { %4202 = vmatpush3.bf16.xpose.msk.msra.mxu1 %vm4860_vm2, %v4944_v33 }
 0xbdf   : > { %4203 = vmatprep.subr.bf16.mxu1 %v4628_v15 }
 0xbe6   : > { %4206 = vmatpush3.bf16.xpose.msk.msra.mxu1 %vm4860_vm2, %v4958_v36 }
 0xbe7   : > { %4263 = vmatprep.subr.bf16.mxu1 %v4628_v15 }
 0xc80   : > { %v1434_v55 = vpop.f32.mrb[10].mxu1 }
 0xc81   : > { %v1438_v41 = vmax.f32 %v1434_v55, 1e-35  ;;  %v3518_v58 = vpop.f32.mrb[11].mxu1 }
 0xc83   : > { %4514 = vrcp.f32 %v1438_v41 }
 0xc8d   : > { %v4515_v59 = vpop.eup %4514 }
 0xc8e   : > { %3552 = vmatmul.mubr.msk.f32.vlgmr.msra.gmra.mrb[12].mxu1 %vm407_vm0, %v4515_v59 }
 0xc8f   : > { %4265 = vmatpush3.bf16.msra.mxu1 %v4866_v26  ;;  %3656 = vmatprep.mubr.msk.f32.mxu1 %vm4629_vm1, %v4630_v17 }
 0xc90   : > { %4266 = vmatprep.subr.bf16.mxu1 %v4628_v15 }
 0xc93   : > { %4268 = vmatpush3.bf16.msra.mxu1 %v4882_v56 }
 0xc94   : > { %4269 = vmatprep.subr.bf16.mxu1 %v4628_v15 }
 0xc97   : > { %4271 = vmatpush3.bf16.msra.mxu1 %v4894_v7 }
 0xc98   : > { %4272 = vmatprep.subr.bf16.mxu1 %v4628_v15 }
 0xc9b   : > { %4274 = vmatpush3.bf16.msra.mxu1 %v4910_v20 }
 0xc9c   : > { %4275 = vmatprep.subr.bf16.mxu1 %v4628_v15 }
 0xc9f   : > { %4277 = vmatpush3.bf16.msra.mxu1 %v4920_v6 }
 0xca0   : > { %4278 = vmatprep.subr.bf16.mxu1 %v4628_v15 }
 0xca3   : > { %4280 = vmatpush3.bf16.msra.mxu1 %v4934_v30 }
 0xca4   : > { %4281 = vmatprep.subr.bf16.mxu1 %v4628_v15 }
 0xca7   : > { %4283 = vmatpush3.bf16.msra.mxu1 %v4944_v33 }
 0xca8   : > { %4284 = vmatprep.subr.bf16.mxu1 %v4628_v15 }
 0xcab   : > { %4286 = vmatpush3.bf16.msra.mxu1 %v4958_v36 }
 0xcac   : > { %4287 = vmatprep.subr.bf16.mxu1 %v4628_v15 }
 0xd61   : > { %v1509_v60 = vpop.f32.mrb[12].mxu1 }
 0xd62   : > { %v1513_v0 = vmax.f32 %v1509_v60, 1e-35  ;;  %v3553_v4 = vpop.f32.mrb[13].mxu1 }
 0xd64   : > { %4516 = vrcp.f32 %v1513_v0 }
 0xd6e   : > { %v4517_v10 = vpop.eup %4516 }
 0xd6f   : > { %v1515_v12 = vmul.f32 0.5, %v4517_v10 }
 0xd71   : > { %3587 = vmatmul.mubr.f32.vlgmr.msra.gmra.mrb[28].mxu0 %v1515_v12 }
 0xd72   : > { %4234 = vmatpush3.bf16.xpose.msk.msra.mxu0 %vm4860_vm2, %v4866_v26  ;;  %3621 = vmatprep.mubr.msk.f32.mxu0 %vm4629_vm1, %v4630_v17 }
 0xd73   : > { %4235 = vmatprep.subr.bf16.mxu0 %v4628_v15 }
 0xd7a   : > { %4238 = vmatpush3.bf16.xpose.msk.msra.mxu0 %vm4860_vm2, %v4882_v56 }
 0xd7b   : > { %4239 = vmatprep.subr.bf16.mxu0 %v4628_v15 }
 0xd82   : > { %4242 = vmatpush3.bf16.xpose.msk.msra.mxu0 %vm4860_vm2, %v4894_v7 }
 0xd83   : > { %4243 = vmatprep.subr.bf16.mxu0 %v4628_v15 }
 0xd8a   : > { %4246 = vmatpush3.bf16.xpose.msk.msra.mxu0 %vm4860_vm2, %v4910_v20 }
 0xd8b   : > { %4247 = vmatprep.subr.bf16.mxu0 %v4628_v15 }
 0xd92   : > { %4250 = vmatpush3.bf16.xpose.msk.msra.mxu0 %vm4860_vm2, %v4920_v6 }
 0xd93   : > { %4251 = vmatprep.subr.bf16.mxu0 %v4628_v15 }
 0xd9a   : > { %4254 = vmatpush3.bf16.xpose.msk.msra.mxu0 %vm4860_vm2, %v4934_v30 }
 0xd9b   : > { %4255 = vmatprep.subr.bf16.mxu0 %v4628_v15 }
 0xda2   : > { %4258 = vmatpush3.bf16.xpose.msk.msra.mxu0 %vm4860_vm2, %v4944_v33 }
 0xda3   : > { %4259 = vmatprep.subr.bf16.mxu0 %v4628_v15 }
 0xdaa   : > { %4262 = vmatpush3.bf16.xpose.msk.msra.mxu0 %vm4860_vm2, %v4958_v36 }
 0xdab   : > { %4319 = vmatprep.subr.bf16.mxu0 %v4628_v15 }
 0xe44   : > { %v1582_v1 = vpop.f32.mrb[28].mxu0 }
 0xe45   : > { %v1586_v14 = vmax.f32 %v1582_v1, 1e-35  ;;  %v3588_v9 = vpop.f32.mrb[29].mxu0 }
 0xe47   : > { %4518 = vrcp.f32 %v1586_v14 }
 0xe51   : > { %v4519_v19 = vpop.eup %4518 }
 0xe52   : > { %3622 = vmatmul.mubr.msk.f32.vlgmr.msra.gmra.mrb[30].mxu0 %vm407_vm0, %v4519_v19 }
 0xe53   : > { %4321 = vmatpush3.bf16.msra.mxu0 %v4866_v26  ;;  %3726 = vmatprep.mubr.msk.f32.mxu0 %vm4629_vm1, %v4630_v17 }
 0xe54   : > { %4322 = vmatprep.subr.bf16.mxu0 %v4628_v15 }
 0xe57   : > { %4324 = vmatpush3.bf16.msra.mxu0 %v4882_v56 }
 0xe58   : > { %4325 = vmatprep.subr.bf16.mxu0 %v4628_v15 }
 0xe5b   : > { %4327 = vmatpush3.bf16.msra.mxu0 %v4894_v7 }
 0xe5c   : > { %4328 = vmatprep.subr.bf16.mxu0 %v4628_v15 }
 0xe5f   : > { %4330 = vmatpush3.bf16.msra.mxu0 %v4910_v20 }
 0xe60   : > { %4331 = vmatprep.subr.bf16.mxu0 %v4628_v15 }
 0xe63   : > { %4333 = vmatpush3.bf16.msra.mxu0 %v4920_v6 }
 0xe64   : > { %4334 = vmatprep.subr.bf16.mxu0 %v4628_v15 }
 0xe67   : > { %4336 = vmatpush3.bf16.msra.mxu0 %v4934_v30 }
 0xe68   : > { %4337 = vmatprep.subr.bf16.mxu0 %v4628_v15 }
 0xe6b   : > { %4339 = vmatpush3.bf16.msra.mxu0 %v4944_v33 }
 0xe6c   : > { %4340 = vmatprep.subr.bf16.mxu0 %v4628_v15 }
 0xe6f   : > { %4342 = vmatpush3.bf16.msra.mxu0 %v4958_v36 }
 0xe70   : > { %4343 = vmatprep.subr.bf16.mxu0 %v4628_v15 }
 0xf25   : > { %v1657_v22 = vpop.f32.mrb[30].mxu0 }
 0xf26   : > { %v1661_v24 = vmax.f32 %v1657_v22, 1e-35  ;;  %v3623_v63 = vpop.f32.mrb[31].mxu0 }
 0xf28   : > { %4520 = vrcp.f32 %v1661_v24 }
 0xf32   : > { %v4521_v37 = vpop.eup %4520 }
 0xf33   : > { %v1663_v2 = vmul.f32 0.5, %v4521_v37 }
 0xf35   : > { %3657 = vmatmul.mubr.f32.vlgmr.msra.gmra.mrb[14].mxu1 %v1663_v2 }
 0xf36   : > { %4290 = vmatpush3.bf16.xpose.msk.msra.mxu1 %vm4860_vm2, %v4866_v26  ;;  %3691 = vmatprep.mubr.msk.f32.mxu1 %vm4629_vm1, %v4630_v17 }
 0xf37   : > { %4291 = vmatprep.subr.bf16.mxu1 %v4628_v15 }
 0xf3e   : > { %4294 = vmatpush3.bf16.xpose.msk.msra.mxu1 %vm4860_vm2, %v4882_v56 }
 0xf3f   : > { %4295 = vmatprep.subr.bf16.mxu1 %v4628_v15 }
 0xf46   : > { %4298 = vmatpush3.bf16.xpose.msk.msra.mxu1 %vm4860_vm2, %v4894_v7 }
 0xf47   : > { %4299 = vmatprep.subr.bf16.mxu1 %v4628_v15 }
 0xf4e   : > { %4302 = vmatpush3.bf16.xpose.msk.msra.mxu1 %vm4860_vm2, %v4910_v20 }
 0xf4f   : > { %4303 = vmatprep.subr.bf16.mxu1 %v4628_v15 }
 0xf56   : > { %4306 = vmatpush3.bf16.xpose.msk.msra.mxu1 %vm4860_vm2, %v4920_v6 }
 0xf57   : > { %4307 = vmatprep.subr.bf16.mxu1 %v4628_v15 }
 0xf5e   : > { %4310 = vmatpush3.bf16.xpose.msk.msra.mxu1 %vm4860_vm2, %v4934_v30 }
 0xf5f   : > { %4311 = vmatprep.subr.bf16.mxu1 %v4628_v15 }
 0xf66   : > { %4314 = vmatpush3.bf16.xpose.msk.msra.mxu1 %vm4860_vm2, %v4944_v33 }
 0xf67   : > { %4315 = vmatprep.subr.bf16.mxu1 %v4628_v15 }
 0xf6e   : > { %4318 = vmatpush3.bf16.xpose.msk.msra.mxu1 %vm4860_vm2, %v4958_v36 }
 0xf6f   : > { %4375 = vmatprep.subr.bf16.mxu1 %v4628_v15 }
0x1008   : > { %v1730_v38 = vpop.f32.mrb[14].mxu1 }
0x1009   : > { %v1734_v61 = vmax.f32 %v1730_v38, 1e-35  ;;  %v3658_v39 = vpop.f32.mrb[15].mxu1 }
0x100b   : > { %4522 = vrcp.f32 %v1734_v61 }
0x1015   : > { %v4523_v8 = vpop.eup %4522 }
0x1016   : > { %3692 = vmatmul.mubr.msk.f32.vlgmr.msra.gmra.mrb[16].mxu1 %vm407_vm0, %v4523_v8 }
0x1017   : > { %4377 = vmatpush3.bf16.msra.mxu1 %v4866_v26  ;;  %3796 = vmatprep.mubr.msk.f32.mxu1 %vm4629_vm1, %v4630_v17 }
0x1018   : > { %4378 = vmatprep.subr.bf16.mxu1 %v4628_v15 }
0x101b   : > { %4380 = vmatpush3.bf16.msra.mxu1 %v4882_v56 }
0x101c   : > { %4381 = vmatprep.subr.bf16.mxu1 %v4628_v15 }
0x101f   : > { %4383 = vmatpush3.bf16.msra.mxu1 %v4894_v7 }
0x1020   : > { %4384 = vmatprep.subr.bf16.mxu1 %v4628_v15 }
0x1023   : > { %4386 = vmatpush3.bf16.msra.mxu1 %v4910_v20 }
0x1024   : > { %4387 = vmatprep.subr.bf16.mxu1 %v4628_v15 }
0x1027   : > { %4389 = vmatpush3.bf16.msra.mxu1 %v4920_v6 }
0x1028   : > { %4390 = vmatprep.subr.bf16.mxu1 %v4628_v15 }
0x102b   : > { %4392 = vmatpush3.bf16.msra.mxu1 %v4934_v30 }
0x102c   : > { %4393 = vmatprep.subr.bf16.mxu1 %v4628_v15 }
0x102f   : > { %4395 = vmatpush3.bf16.msra.mxu1 %v4944_v33 }
0x1030   : > { %4396 = vmatprep.subr.bf16.mxu1 %v4628_v15 }
0x1033   : > { %4398 = vmatpush3.bf16.msra.mxu1 %v4958_v36 }
0x1034   : > { %4400 = vmatprep.subr.bf16.mxu1 %v4719_v3 }
0x10e9   : > { %v1805_v40 = vpop.f32.mrb[16].mxu1 }
0x10ea   : > { %v1809_v42 = vmax.f32 %v1805_v40, 1e-35  ;;  %v3693_v44 = vpop.f32.mrb[17].mxu1 }
0x10ec   : > { %4524 = vrcp.f32 %v1809_v42 }
0x10f6   : > { %v4525_v23 = vpop.eup %4524 }
0x10f7   : > { %v1811_v47 = vmul.f32 0.5, %v4525_v23 }
0x10f9   : > { %3727 = vmatmul.mubr.f32.vlgmr.msra.gmra.mrb[32].mxu0 %v1811_v47 }
0x10fa   : > { %4346 = vmatpush3.bf16.xpose.msk.msra.mxu0 %vm4860_vm2, %v4866_v26  ;;  %3761 = vmatprep.mubr.msk.f32.mxu0 %vm4629_vm1, %v4630_v17 }
0x10fb   : > { %4347 = vmatprep.subr.bf16.mxu0 %v4628_v15 }
0x1102   : > { %4350 = vmatpush3.bf16.xpose.msk.msra.mxu0 %vm4860_vm2, %v4882_v56 }
0x1103   : > { %4351 = vmatprep.subr.bf16.mxu0 %v4628_v15 }
0x110a   : > { %4354 = vmatpush3.bf16.xpose.msk.msra.mxu0 %vm4860_vm2, %v4894_v7  ;;  %v2032_v7 = vlaneseq }
0x110b   : > { %4355 = vmatprep.subr.bf16.mxu0 %v4628_v15 }
0x1112   : > { %4358 = vmatpush3.bf16.xpose.msk.msra.mxu0 %vm4860_vm2, %v4910_v20  ;;  %v5454_v20 = vshrl.u32 %v2032_v7, 7 }
0x1113   : > { %4359 = vmatprep.subr.bf16.mxu0 %v4628_v15 }
0x111a   : > { %4362 = vmatpush3.bf16.xpose.msk.msra.mxu0 %vm4860_vm2, %v4920_v6  ;;  %v2034_v6 = vsub.s32 0, %v5454_v20 }
0x111b   : > { %4363 = vmatprep.subr.bf16.mxu0 %v4628_v15 }
0x1122   : > { %4366 = vmatpush3.bf16.xpose.msk.msra.mxu0 %vm4860_vm2, %v4934_v30 }
0x1123   : > { %4367 = vmatprep.subr.bf16.mxu0 %v4628_v15 }
0x112a   : > { %4370 = vmatpush3.bf16.xpose.msk.msra.mxu0 %vm4860_vm2, %v4944_v33 }
0x112b   : > { %4371 = vmatprep.subr.bf16.mxu0 %v4628_v15 }
0x1132   : > { %4374 = vmatpush3.bf16.xpose.msk.msra.mxu0 %vm4860_vm2, %v4958_v36 }
0x11cc   : > { %v1878_v17 = vpop.f32.mrb[32].mxu0 }
0x11cd   : > { %v1882_v26 = vmax.f32 %v1878_v17, 1e-35  ;;  %v3728_v56 = vpop.f32.mrb[33].mxu0 }
0x11cf   : > { %4526 = vrcp.f32 %v1882_v26 }
0x11d9   : > { %v4527_v30 = vpop.eup %4526 }
0x11da   : > { %v2035_v48 = vrot.slane %v4527_v30, %v2034_v6  ;;  %3762 = vmatmul.mubr.msk.f32.vlgmr.msra.gmra.mrb[34].mxu0 %vm407_vm0, %v4527_v30 }
0x11dc   : > { %v2037_v15 = vmul.f32 %v4855_v29, %v2035_v48  ;;  %v2036_v21 = vmul.f32 %v4853_v45, %v2035_v48  ;;  %v2039_v50 = vmul.f32 %v4868_v43, %v2035_v48  ;;  %v2038_v51 = vmul.f32 %v4875_v54, %v2035_v48 }
0x11dd   : > { %v2041_v49 = vmul.f32 %v4884_v57, %v2035_v48  ;;  %v2040_v55 = vmul.f32 %v4888_v46, %v2035_v48  ;;  %v2043_v59 = vmul.f32 %v4896_v11, %v2035_v48  ;;  %v2042_v60 = vmul.f32 %v4903_v18, %v2035_v48 }
0x11de   : > { %v2055_v33 = vsel %vm407_vm0, %v2037_v15, 0.0  ;;  %v2052_v36 = vsel %vm407_vm0, %v2036_v21, 0.0  ;;  %v2061_v52 = vsel %vm407_vm0, %v2039_v50, 0.0  ;;  %v2058_v53 = vsel %vm407_vm0, %v2038_v51, 0.0 }
0x11df   : > { %2056 = vadd.xlane.f32.xlu1 %v2055_v33  ;;  %2053 = vadd.xlane.f32.xlu0 %v2052_v36  ;;  %v2067_v41 = vsel %vm407_vm0, %v2041_v49, 0.0  ;;  %v2064_v58 = vsel %vm407_vm0, %v2040_v55, 0.0  ;;  %v2073_v0 = vsel %vm407_vm0, %v2043_v59, 0.0  ;;  %v2070_v4 = vsel %vm407_vm0, %v2042_v60, 0.0 }
0x11e0   : > { %v2045_v10 = vmul.f32 %v4912_v62, %v2035_v48  ;;  %v2044_v12 = vmul.f32 %v4915_v25, %v2035_v48  ;;  %v2047_v9 = vmul.f32 %v4922_v27, %v2035_v48  ;;  %v2046_v19 = vmul.f32 %v4928_v28, %v2035_v48 }
0x11e1   : > { %v2049_v63 = vmul.f32 %v4936_v31, %v2035_v48  ;;  %v2048_v37 = vmul.f32 %v4939_v32, %v2035_v48  ;;  %v2051_v61 = vmul.f32 %v4946_v34, %v2035_v48  ;;  %v2050_v39 = vmul.f32 %v4952_v35, %v2035_v48 }
0x11e2   : > { %v2079_v1 = vsel %vm407_vm0, %v2045_v10, 0.0  ;;  %v2076_v14 = vsel %vm407_vm0, %v2044_v12, 0.0  ;;  %v2085_v22 = vsel %vm407_vm0, %v2047_v9, 0.0  ;;  %v2082_v24 = vsel %vm407_vm0, %v2046_v19, 0.0 }
0x11e3   : > { %2062 = vadd.xlane.f32.xlu1 %v2061_v52  ;;  %2059 = vadd.xlane.f32.xlu0 %v2058_v53  ;;  %v2091_v2 = vsel %vm407_vm0, %v2049_v63, 0.0  ;;  %v2088_v38 = vsel %vm407_vm0, %v2048_v37, 0.0  ;;  %v2097_v8 = vsel %vm407_vm0, %v2051_v61, 0.0  ;;  %v2094_v40 = vsel %vm407_vm0, %v2050_v39, 0.0 }
0x11e7   : > { %2068 = vadd.xlane.f32.xlu1 %v2067_v41  ;;  %2065 = vadd.xlane.f32.xlu0 %v2064_v58 }
0x11eb   : > { %2074 = vadd.xlane.f32.xlu1 %v2073_v0  ;;  %2071 = vadd.xlane.f32.xlu0 %v2070_v4 }
0x11ef   : > { %2080 = vadd.xlane.f32.xlu1 %v2079_v1  ;;  %2077 = vadd.xlane.f32.xlu0 %v2076_v14 }
0x11f3   : > { %2086 = vadd.xlane.f32.xlu1 %v2085_v22  ;;  %2083 = vadd.xlane.f32.xlu0 %v2082_v24 }
0x11f7   : > { %2092 = vadd.xlane.f32.xlu1 %v2091_v2  ;;  %2089 = vadd.xlane.f32.xlu0 %v2088_v38 }
0x11fb   : > { %2098 = vadd.xlane.f32.xlu1 %v2097_v8  ;;  %2095 = vadd.xlane.f32.xlu0 %v2094_v40 }
0x12ad   : > { %v1953_v42 = vpop.f32.mrb[34].mxu0 }
0x12ae   : > { %v1957_v44 = vmax.f32 %v1953_v42, 1e-35  ;;  %v3763_v23 = vpop.f32.mrb[35].mxu0 }
0x12b0   : > { %4528 = vrcp.f32 %v1957_v44 }
0x12ba   : > { %v4529_v47 = vpop.eup %4528 }
0x12bb   : > { %v1959_v17 = vmul.f32 0.5, %v4529_v47 }
0x12bd   : > { %3797 = vmatmul.mubr.f32.vlgmr.msra.gmra.mrb[18].mxu1 %v1959_v17 }
0x12be   : > { %4402 = vmatpush3.bf16.msra.mxu1 %v4719_v3 }
0x12bf   : > { %4404 = vmatprep.subr.bf16.mxu1 %v4721_v5 }
0x12c2   : > { %4406 = vmatpush3.bf16.msra.mxu1 %v4721_v5 }
0x12c3   : > { %4408 = vmatprep.subr.bf16.mxu1 %v4728_v13 }
0x12c6   : > { %4410 = vmatpush3.bf16.msra.mxu1 %v4728_v13 }
0x12c7   : > { %4412 = vmatprep.subr.bf16.mxu1 %v4732_v16 }
0x12ca   : > { %4414 = vmatpush3.bf16.msra.mxu1 %v4732_v16 }
0x1390   : > { %v2026_v26 = vpop.f32.mrb[18].mxu1 }
0x1391   : > { %v2030_v56 = vmax.f32 %v2026_v26, 1e-35  ;;  %v3798_v7 = vpop.f32.mrb[19].mxu1 }
0x1393   : > { %4530 = vrcp.f32 %v2030_v56 }
0x139d   : > { %v4531_v30 = vpop.eup %4530 }
0x139e   : > { %v2151_v3 = vrot.slane %v4531_v30, %v2034_v6 }
0x13a0   : > { %v2152_v48 = vmul.f32 %v4853_v45, %v2151_v3  ;;  %v2153_v5 = vmul.f32 %v4855_v29, %v2151_v3  ;;  %v2154_v13 = vmul.f32 %v4875_v54, %v2151_v3  ;;  %v2155_v16 = vmul.f32 %v4868_v43, %v2151_v3 }
0x13a1   : > { %v2156_v15 = vmul.f32 %v4888_v46, %v2151_v3  ;;  %v2157_v45 = vmul.f32 %v4884_v57, %v2151_v3  ;;  %v2158_v29 = vmul.f32 %v4903_v18, %v2151_v3  ;;  %v2159_v54 = vmul.f32 %v4896_v11, %v2151_v3 }
0x13a2   : > { %3815 = vmatprep.mubr.msk.f32.mxu1 %vm407_vm0, %v2152_v48  ;;  %v2160_v20 = vmul.f32 %v4915_v25, %v2151_v3  ;;  %v2161_v43 = vmul.f32 %v4912_v62, %v2151_v3  ;;  %v2162_v46 = vmul.f32 %v4928_v28, %v2151_v3  ;;  %v2163_v57 = vmul.f32 %v4922_v27, %v2151_v3  ;;  %v2057_v28 = vpop.xlane.xlu1 %2056  ;;  %v2054_v27 = vpop.xlane.xlu0 %2053 }
0x13a3   : > { %3816 = vmatmul.mubr.msk.f32.vlgmr.msra.gmra.mrb[20].mxu1 %vm407_vm0, %v2153_v5  ;;  %v2164_v18 = vmul.f32 %v4939_v32, %v2151_v3  ;;  %v2165_v11 = vmul.f32 %v4936_v31, %v2151_v3  ;;  %v2166_v25 = vmul.f32 %v4952_v35, %v2151_v3  ;;  %v2167_v62 = vmul.f32 %v4946_v34, %v2151_v3 }
0x13a4   : > { %3818 = vmatprep.mubr.msk.f32.mxu1 %vm407_vm0, %v2154_v13  ;;  %v2101_v36 = vmax.f32 %v2057_v28, 1e-35  ;;  %v2100_v50 = vmax.f32 %v2054_v27, 1e-35 }
0x13a6   : > { %v2063_v6 = vpop.xlane.xlu1 %2062  ;;  %v2060_v32 = vpop.xlane.xlu0 %2059  ;;  %4532 = vrcp.f32 %v2101_v36 }
0x13a7   : > { %3819 = vmatmul.mubr.msk.f32.gmra.mrb[22].mxu1 %vm407_vm0, %v2155_v16  ;;  %v2103_v35 = vmax.f32 %v2063_v6, 1e-35  ;;  %4534 = vrcp.f32 %v2100_v50  ;;  %v2102_v52 = vmax.f32 %v2060_v32, 1e-35 }
0x13a8   : > { %3821 = vmatprep.mubr.msk.f32.mxu1 %vm407_vm0, %v2156_v15 }
0x13a9   : > { %4536 = vrcp.f32 %v2103_v35 }
0x13aa   : > { %v2069_v21 = vpop.xlane.xlu1 %2068  ;;  %v2066_v33 = vpop.xlane.xlu0 %2065  ;;  %4538 = vrcp.f32 %v2102_v52 }
0x13ab   : > { %3822 = vmatmul.mubr.msk.f32.gmra.mrb[24].mxu1 %vm407_vm0, %v2157_v45  ;;  %v2105_v34 = vmax.f32 %v2069_v21, 1e-35  ;;  %v2104_v55 = vmax.f32 %v2066_v33, 1e-35 }
0x13ac   : > { %3824 = vmatprep.mubr.msk.f32.mxu1 %vm407_vm0, %v2158_v29 }
0x13ad   : > { %4540 = vrcp.f32 %v2105_v34 }
0x13ae   : > { %v2075_v31 = vpop.xlane.xlu1 %2074  ;;  %v2072_v51 = vpop.xlane.xlu0 %2071  ;;  %4542 = vrcp.f32 %v2104_v55 }
0x13af   : > { %3825 = vmatmul.mubr.msk.f32.gmra.mrb[26].mxu1 %vm407_vm0, %v2159_v54  ;;  %v2107_v41 = vmax.f32 %v2075_v31, 1e-35  ;;  %v2106_v58 = vmax.f32 %v2072_v51, 1e-35 }
0x13b0   : > { %3827 = vmatprep.mubr.msk.f32.mxu1 %vm407_vm0, %v2160_v20  ;;  %v4533_v60 = vpop.eup %4532 }
0x13b1   : > { %v4535_v4 = vpop.eup %4534  ;;  %4544 = vrcp.f32 %v2107_v41  ;;  %v2133_v1 = vmul.f32 0.5, %v4533_v60 }
0x13b2   : > { %v2081_v53 = vpop.xlane.xlu1 %2080  ;;  %v2078_v49 = vpop.xlane.xlu0 %2077  ;;  %4546 = vrcp.f32 %v2106_v58  ;;  %v2132_v19 = vmul.f32 0.5, %v4535_v4 }
0x13b3   : > { %3828 = vmatmul.mubr.msk.f32.gmra.mrb[28].mxu1 %vm407_vm0, %v2161_v43  ;;  %v2109_v10 = vmax.f32 %v2081_v53, 1e-35  ;;  %v2108_v12 = vmax.f32 %v2078_v49, 1e-35  ;;  %v4537_v14 = vpop.eup %4536 }
0x13b4   : > { %3830 = vmatprep.mubr.msk.f32.mxu1 %vm407_vm0, %v2162_v46  ;;  %v4539_v22 = vpop.eup %4538  ;;  %v2135_v8 = vmul.f32 0.5, %v4537_v14 }
0x13b5   : > { %4548 = vrcp.f32 %v2109_v10  ;;  %v2134_v44 = vmul.f32 0.5, %v4539_v22 }
0x13b6   : > { %v2087_v59 = vpop.xlane.xlu1 %2086  ;;  %v2084_v0 = vpop.xlane.xlu0 %2083  ;;  %4550 = vrcp.f32 %v2108_v12 }
0x13b7   : > { %3831 = vmatmul.mubr.msk.f32.gmra.mrb[30].mxu1 %vm407_vm0, %v2163_v57  ;;  %v2111_v2 = vmax.f32 %v2087_v59, 1e-35  ;;  %v2110_v39 = vmax.f32 %v2084_v0, 1e-35  ;;  %v4541_v40 = vpop.eup %4540 }
0x13b8   : > { %3833 = vmatprep.mubr.msk.f32.mxu1 %vm407_vm0, %v2164_v18  ;;  %v4543_v23 = vpop.eup %4542  ;;  %v2137_v3 = vmul.f32 0.5, %v4541_v40 }
0x13b9   : > { %4552 = vrcp.f32 %v2111_v2  ;;  %v2136_v16 = vmul.f32 0.5, %v4543_v23 }
0x13ba   : > { %v2093_v24 = vpop.xlane.xlu1 %2092  ;;  %v2090_v38 = vpop.xlane.xlu0 %2089  ;;  %4554 = vrcp.f32 %v2110_v39 }
0x13bb   : > { %3834 = vmatmul.mubr.msk.f32.gmra.mrb[32].mxu1 %vm407_vm0, %v2165_v11  ;;  %v2113_v26 = vmax.f32 %v2093_v24, 1e-35  ;;  %v2112_v7 = vmax.f32 %v2090_v38, 1e-35  ;;  %v4545_v48 = vpop.eup %4544 }
0x13bc   : > { %3836 = vmatprep.mubr.msk.f32.mxu1 %vm407_vm0, %v2166_v25  ;;  %v4547_v15 = vpop.eup %4546  ;;  %v2139_v46 = vmul.f32 0.5, %v4545_v48 }
0x13bd   : > { %4556 = vrcp.f32 %v2113_v26  ;;  %v2138_v11 = vmul.f32 0.5, %v4547_v15 }
0x13be   : > { %v2099_v30 = vpop.xlane.xlu1 %2098  ;;  %v2096_v5 = vpop.xlane.xlu0 %2095  ;;  %4558 = vrcp.f32 %v2112_v7 }
0x13bf   : > { %3837 = vmatmul.mubr.msk.f32.gmra.mrb[34].mxu1 %vm407_vm0, %v2167_v62  ;;  %v2115_v54 = vmax.f32 %v2099_v30, 1e-35  ;;  %v2114_v43 = vmax.f32 %v2096_v5, 1e-35  ;;  %v4549_v57 = vpop.eup %4548 }
0x13c0   : > { %v4551_v25 = vpop.eup %4550  ;;  %v2141_v6 = vmul.f32 0.5, %v4549_v57 }
0x13c1   : > { %4560 = vrcp.f32 %v2115_v54  ;;  %v2140_v33 = vmul.f32 0.5, %v4551_v25 }
0x13c2   : > { %4562 = vrcp.f32 %v2114_v43 }
0x13c3   : > { %v4553_v32 = vpop.eup %4552 }
0x13c4   : > { %v4555_v36 = vpop.eup %4554  ;;  %v2143_v35 = vmul.f32 0.5, %v4553_v32 }
0x13c5   : > { %v2142_v34 = vmul.f32 0.5, %v4555_v36 }
0x13c7   : > { %v4557_v52 = vpop.eup %4556 }
0x13c8   : > { %v4559_v49 = vpop.eup %4558  ;;  %v2145_v59 = vmul.f32 0.5, %v4557_v52 }
0x13c9   : > { %v2144_v4 = vmul.f32 0.5, %v4559_v49 }
0x13cb   : > { %v4561_v60 = vpop.eup %4560 }
0x13cc   : > { %v4563_v10 = vpop.eup %4562 }
0x13cd   : > { %v2146_v22 = vmul.f32 0.5, %v4563_v10 }
0x1476   : > { %v3817_v9 = vpop.f32.mrb[20].mxu1 }
0x1477   : > { %v2362_v63 = vmul.f32 %v3817_v9, %v2133_v1  ;;  %v2282_v37 = vpop.f32.mrb[21].mxu1  ;;  %v2147_v9 = vmul.f32 0.5, %v4561_v60 }
0x1478   : > { %v2361_v61 = vmul.f32 %v2282_v37, %v2132_v19 }
0x1479   : > { %2378 = vst [vmem:[%s5536_s11 + $0x8] sm:$0xff] %v2362_v63 }
0x147a   : > { %2377 = vst [vmem:[%s5536_s11] sm:$0xff] %v2361_v61  ;;  %v3820_v42 = vpop.f32.mrb[22].mxu1 }
0x147b   : > { %v2364_v47 = vmul.f32 %v3820_v42, %v2135_v8  ;;  %v2292_v17 = vpop.f32.mrb[23].mxu1 }
0x147c   : > { %v2363_v56 = vmul.f32 %v2292_v17, %v2134_v44 }
0x147d   : > { %2380 = vst [vmem:[%s5536_s11 + $0x18] sm:$0xff] %v2364_v47 }
0x147e   : > { %2379 = vst [vmem:[%s5536_s11 + $0x10] sm:$0xff] %v2363_v56  ;;  %v3823_v13 = vpop.f32.mrb[24].mxu1 }
0x147f   : > { %v2366_v45 = vmul.f32 %v3823_v13, %v2137_v3  ;;  %v2302_v29 = vpop.f32.mrb[25].mxu1 }
0x1480   : > { %v2365_v20 = vmul.f32 %v2302_v29, %v2136_v16 }
0x1481   : > { %2382 = vst [vmem:[%s5536_s11 + $0x28] sm:$0xff] %v2366_v45 }
0x1482   : > { %2381 = vst [vmem:[%s5536_s11 + $0x20] sm:$0xff] %v2365_v20  ;;  %v3826_v18 = vpop.f32.mrb[26].mxu1 }
0x1483   : > { %v2368_v62 = vmul.f32 %v3826_v18, %v2139_v46  ;;  %v2312_v28 = vpop.f32.mrb[27].mxu1 }
0x1484   : > { %v2367_v27 = vmul.f32 %v2312_v28, %v2138_v11 }
0x1485   : > { %2384 = vst [vmem:[%s5536_s11 + $0x38] sm:$0xff] %v2368_v62 }
0x1486   : > { %2383 = vst [vmem:[%s5536_s11 + $0x30] sm:$0xff] %v2367_v27  ;;  %v3829_v21 = vpop.f32.mrb[28].mxu1 }
0x1487   : > { %v2370_v50 = vmul.f32 %v3829_v21, %v2141_v6  ;;  %v2322_v31 = vpop.f32.mrb[29].mxu1 }
0x1488   : > { %v2369_v51 = vmul.f32 %v2322_v31, %v2140_v33 }
0x1489   : > { %2386 = vst [vmem:[%s5536_s11 + $0x48] sm:$0xff] %v2370_v50 }
0x148a   : > { %2385 = vst [vmem:[%s5536_s11 + $0x40] sm:$0xff] %v2369_v51  ;;  %v3832_v53 = vpop.f32.mrb[30].mxu1 }
0x148b   : > { %v2372_v55 = vmul.f32 %v3832_v53, %v2143_v35  ;;  %v2332_v41 = vpop.f32.mrb[31].mxu1 }
0x148c   : > { %v2371_v58 = vmul.f32 %v2332_v41, %v2142_v34 }
0x148d   : > { %2388 = vst [vmem:[%s5536_s11 + $0x58] sm:$0xff] %v2372_v55 }
0x148e   : > { %2387 = vst [vmem:[%s5536_s11 + $0x50] sm:$0xff] %v2371_v58  ;;  %v3835_v0 = vpop.f32.mrb[32].mxu1 }
0x148f   : > { %v2374_v12 = vmul.f32 %v3835_v0, %v2145_v59  ;;  %v2342_v1 = vpop.f32.mrb[33].mxu1 }
0x1490   : > { %v2373_v14 = vmul.f32 %v2342_v1, %v2144_v4 }
0x1491   : > { %2390 = vst [vmem:[%s5536_s11 + $0x68] sm:$0xff] %v2374_v12 }
0x1492   : > { %2389 = vst [vmem:[%s5536_s11 + $0x60] sm:$0xff] %v2373_v14  ;;  %v3838_v19 = vpop.f32.mrb[34].mxu1 }
0x1493   : > { %v2376_v24 = vmul.f32 %v3838_v19, %v2147_v9  ;;  %v2352_v63 = vpop.f32.mrb[35].mxu1 }
0x1494   : > { %v2375_v37 = vmul.f32 %v2352_v63, %v2146_v22 }
0x1495   : > { %2392 = vst [vmem:[%s5536_s11 + $0x78] sm:$0xff] %v2376_v24 }
0x1496   : > { %2391 = vst [vmem:[%s5536_s11 + $0x70] sm:$0xff] %v2375_v37 }
0x1497   : > { %4577 = shalt.err (!%p4574_p3)
}
0x1498   : > { %s4578_s30 = scalar_lea.hbm %s5557_s25, 2048  ;;  %s4582_s6 = scalar_lea.hbm %s5609_s3, 4096 }
0x1499   : > { %p4579_p4 = scmp.ne.s32.totalorder %s5557_s25, %s4578_s30  ;;  %p4583_p9 = scmp.lt.u32.totalorder %s5557_s25, %s5609_s3 }
0x149a   : > { %p4584_p10 = scmp.lt.u32.totalorder %s4582_s6, %s4578_s30  ;;  %p4586_p12 = scmp.lt.u32.totalorder %s4578_s30, %s5557_s25 }
0x149b   : > { %p4580_p7 = pnand %p4579_p4, %p4693_p5 }
0x149c   : > { %p4585_p11 = por %p4584_p10, %p4583_p9 }
0x149d   : > { %p4581_p8 = pneg %p4580_p7 }
0x149e   : > { %p4587_p13 = por %p4586_p12, %p4585_p11 }
0x14a0   : > { %p4588_p0 = pnand %p4587_p13, %p4581_p8 }
0x14a2   : > { %4591 = shalt.err (!%p4588_p0)
}
0x14a3   : > { %s4633_s9 = smov 128   ;;  %s4634_s10 = smov 8  }
0x14a4   : > { %4415 = dma.vmem_to_hbm [thread:$0]  (%p4693_p5), %s5559_s19, 2048, %s5557_s25, %s5565_s16, %s4633_s9, %s4633_s9, %s4634_s10  }
0x14a5 PF: > { %p4421_p1 = scmp.ge.s32.totalorder %s4626_s15, 2  ;;  %s2422_s11 = sand.u32 1, %s4614_s12  }
0x14a6   : > { %s2423_s17 = scalar_lea.sflag [#allocation3], %s2422_s11 }
0x14a7   : > { %p4418_p2 = pnand %p4421_p1, %p4697_p6 }
0x14a9   : > { %4609 = dma.done.wait (!%p4418_p2), %s2423_s17, 2048  }
0x14aa   : > { %4611 = vsyncadd (!%p4418_p2), %s2423_s17, 4294965248  ;;  %p13_p3 = scmp.ge.s32.totalorder %s4680_s18, 4   ;;  %s5614_s12 = smov %s4618_s13 }
0x14ab   : > { %s5615_s13 = smov %s4622_s14  ;;  %s5616_s14 = smov %s4691_s21 }
0x14ac   : > { %s5617_s15 = smov %s4680_s18  ;;  %15 = sbr.rel (!%p13_p3) target bundleno = 3 (0x3), region = 73 }
0x14b3   :  { %2428 = vsyncpa [#allocation3], 1 }
0x14b4   :  { %2430 = vsyncpa [#allocation3 + $0x1], 1 }

</bundles_post_ra>
